<compile_context>
chip_gen: v7x
topology: tpu7x:2x2x1
jax: 0.10.0
libtpu: 0.0.40
codegen_flags: <defaults>
</compile_context>

<pallas_src>
import math

import jax
import jax.numpy as jnp
from jax.experimental import pallas as pl
from jax.experimental.pallas import tpu as pltpu

LN_EPS = 1e-5  # torch.nn.LayerNorm default


# ----------------------------------------------------------------------------- utils
def _round_up(x, m):
    return ((x + m - 1) // m) * m


def _vmem_limit_bytes(block_shapes):
    """Explicit scoped-VMEM limit: sum of listed blocks x4 (double-buffer + margin)."""
    total = 0
    for shape, dtype in block_shapes:
        n = 1
        for d in shape:
            n *= int(d)
        total += n * jnp.dtype(dtype).itemsize
    need = 4 * total
    return int(min(max(need, 8 * 1024 * 1024), 64 * 1024 * 1024))


def get_slopes(n):
    """ALiBi slopes, identical to the PyTorch module."""
    def get_slopes_power_of_2(n):
        start = 2 ** (-2 ** (-(math.log2(n) - 3)))
        ratio = start
        return [start * ratio ** i for i in range(n)]
    if math.log2(n).is_integer():
        return get_slopes_power_of_2(n)
    closest = 2 ** math.floor(math.log2(n))
    return (get_slopes_power_of_2(closest)
            + get_slopes(2 * closest)[0::2][: n - closest])


def _alibi_bias(slopes, T):
    pos = jnp.arange(T, dtype=jnp.float32)
    rel = pos[None, :] - pos[:, None]                       # bias[i, j] = (j - i)
    return jnp.asarray(slopes, jnp.float32)[:, None, None] * rel[None]   # (nh, T, T)


# ----------------------------------------------------------------------------- kernels
def _make_attention_kernel(n_head, scale):
    """Fused LayerNorm1 + multi-head ALiBi attention + out-proj + residual (per batch)."""
    def kernel(x_ref, g_ref, beta_ref, wq_ref, wk_ref, wv_ref, wo_ref, bo_ref,
               alibi_ref, o_ref, attw_ref):
        xf = x_ref[0].astype(jnp.float32)                   # (T, C), residual source
        mu = jnp.mean(xf, axis=-1, keepdims=True)
        var = jnp.mean(jnp.square(xf - mu), axis=-1, keepdims=True)
        xn = (xf - mu) * jax.lax.rsqrt(var + LN_EPS)
        xn = (xn * g_ref[...] + beta_ref[...]).astype(jnp.bfloat16)

        out = jnp.zeros_like(xf)                            # f32 accumulator over heads
        for h in range(n_head):                             # static unroll
            q = jnp.dot(xn, wq_ref[h], preferred_element_type=jnp.float32)   # (T, hs)
            k = jnp.dot(xn, wk_ref[h], preferred_element_type=jnp.float32)
            v = jnp.dot(xn, wv_ref[h], preferred_element_type=jnp.float32)
            s = jax.lax.dot_general(                        # q @ k^T
                q.astype(jnp.bfloat16), k.astype(jnp.bfloat16),
                (((1,), (1,)), ((), ())),
                preferred_element_type=jnp.float32)         # (T, T)
            s = s * scale + alibi_ref[h]
            s = s - jnp.max(s, axis=-1, keepdims=True)
            p = jnp.exp(s)
            p = p / jnp.sum(p, axis=-1, keepdims=True)      # softmax, f32
            attw_ref[0, h] = p                              # expose attention weights
            y = jnp.dot(p.astype(jnp.bfloat16), v.astype(jnp.bfloat16),
                        preferred_element_type=jnp.float32)  # (T, hs)
            out = out + jnp.dot(y.astype(jnp.bfloat16), wo_ref[h],
                                preferred_element_type=jnp.float32)
        out = out + bo_ref[...] + xf                        # out-proj bias + residual
        o_ref[0] = out.astype(o_ref.dtype)
    return kernel


def _block_ffn_kernel(x_ref, g_ref, beta_ref, w1_ref, b1_ref, w2_ref, b2_ref,
                      o_ref, acc_ref, xn_ref):
    """Fused LayerNorm2 + (Linear->ReLU->Linear) + residual; hidden dim tiled on axis 1."""
    k = pl.program_id(1)

    @pl.when(k == 0)
    def _():
        # LayerNorm computed once per row tile; result stashed in bf16 scratch.
        xf = x_ref[...].astype(jnp.float32)
        mu = jnp.mean(xf, axis=-1, keepdims=True)
        var = jnp.mean(jnp.square(xf - mu), axis=-1, keepdims=True)
        xn = (xf - mu) * jax.lax.rsqrt(var + LN_EPS)
        xn_ref[...] = (xn * g_ref[...] + beta_ref[...]).astype(xn_ref.dtype)
        acc_ref[...] = jnp.zeros_like(acc_ref)

    h = jnp.dot(xn_ref[...], w1_ref[...], preferred_element_type=jnp.float32)
    h = jnp.maximum(h + b1_ref[...], 0.0)                   # bias + ReLU in f32
    acc_ref[...] += jnp.dot(h.astype(w2_ref.dtype), w2_ref[...],
                            preferred_element_type=jnp.float32)

    @pl.when(k == pl.num_programs(1) - 1)
    def _():
        y = x_ref[...].astype(jnp.float32) + acc_ref[...] + b2_ref[...]
        o_ref[...] = y.astype(o_ref.dtype)


def _head_kernel(x_ref, w1_ref, b1_ref, w2_ref, b2_ref, o_ref):
    """Classifier head: Linear -> ReLU -> (dropout = identity) -> Linear."""
    x = x_ref[...].astype(jnp.bfloat16)
    h = jnp.dot(x, w1_ref[...], preferred_element_type=jnp.float32)
    h = jnp.maximum(h + b1_ref[...], 0.0)
    y = jnp.dot(h.astype(w2_ref.dtype), w2_ref[...],
                preferred_element_type=jnp.float32)
    o_ref[...] = (y + b2_ref[...]).astype(o_ref.dtype)


# ----------------------------------------------------------------------------- wrappers
def attention_layer(x, blk, alibi):
    B, T, C = x.shape
    nh, _, hs = blk["wq"].shape
    scale = float(hs) ** -0.5
    kern = _make_attention_kernel(nh, scale)
    vmem = _vmem_limit_bytes([
        ((1, T, C), jnp.bfloat16), ((1, C), jnp.float32), ((1, C), jnp.float32),
        ((nh, C, hs), jnp.bfloat16), ((nh, C, hs), jnp.bfloat16),
        ((nh, C, hs), jnp.bfloat16), ((nh, hs, C), jnp.bfloat16),
        ((1, C), jnp.float32), ((nh, T, T), jnp.float32),
        ((1, T, C), jnp.bfloat16), ((1, nh, T, T), jnp.float32),
    ])
    out, attw = pl.pallas_call(
        kern,
        out_shape=(jax.ShapeDtypeStruct((B, T, C), jnp.bfloat16),
                   jax.ShapeDtypeStruct((B, nh, T, T), jnp.float32)),
        grid_spec=pltpu.PrefetchScalarGridSpec(
            num_scalar_prefetch=0,
            grid=(B,),
            in_specs=[
                pl.BlockSpec((1, T, C), lambda b: (b, 0, 0)),
                pl.BlockSpec((1, C), lambda b: (0, 0)),
                pl.BlockSpec((1, C), lambda b: (0, 0)),
                pl.BlockSpec((nh, C, hs), lambda b: (0, 0, 0)),
                pl.BlockSpec((nh, C, hs), lambda b: (0, 0, 0)),
                pl.BlockSpec((nh, C, hs), lambda b: (0, 0, 0)),
                pl.BlockSpec((nh, hs, C), lambda b: (0, 0, 0)),
                pl.BlockSpec((1, C), lambda b: (0, 0)),
                pl.BlockSpec((nh, T, T), lambda b: (0, 0, 0)),
            ],
            out_specs=(
                pl.BlockSpec((1, T, C), lambda b: (b, 0, 0)),
                pl.BlockSpec((1, nh, T, T), lambda b: (b, 0, 0, 0)),
            ),
        ),
        compiler_params=pltpu.CompilerParams(
            dimension_semantics=("parallel",),
            vmem_limit_bytes=vmem),
    )(x, blk["ln1_g"], blk["ln1_b"], blk["wq"], blk["wk"], blk["wv"],
      blk["wo"], blk["bo"], alibi)
    return out, attw


def ffn_layer(x, blk, *, tm=256, th=512):
    """x: (B, T, C) bf16 -> x + W2 @ relu(W1 @ LN(x) + b1) + b2, row/hidden tiled."""
    B, T, C = x.shape
    H = blk["w1"].shape[1]
    M = B * T
    x2 = x.reshape(M, C)

    tm_eff = min(tm, _round_up(M, 8))         # big row tiles, capped to this problem
    m_pad = _round_up(M, tm_eff)
    if m_pad != M:
        x2 = jnp.pad(x2, ((0, m_pad - M), (0, 0)))
    if H <= th:
        th_eff = H
    elif H % th == 0:
        th_eff = th
    else:
        th_eff = H
    grid = (m_pad // tm_eff, H // th_eff)     # rows parallel, hidden arbitrary (last)

    vmem = _vmem_limit_bytes([
        ((tm_eff, C), jnp.bfloat16), ((1, C), jnp.float32), ((1, C), jnp.float32),
        ((C, th_eff), jnp.bfloat16), ((1, th_eff), jnp.float32),
        ((th_eff, C), jnp.bfloat16), ((1, C), jnp.float32),
        ((tm_eff, C), jnp.bfloat16),                  # output
        ((tm_eff, C), jnp.float32), ((tm_eff, C), jnp.bfloat16),   # scratch
    ])
    out2 = pl.pallas_call(
        _block_ffn_kernel,
        out_shape=jax.ShapeDtypeStruct((m_pad, C), jnp.bfloat16),
        grid_spec=pltpu.PrefetchScalarGridSpec(
            num_scalar_prefetch=0,
            grid=grid,
            in_specs=[
                pl.BlockSpec((tm_eff, C), lambda i, k: (i, 0)),
                pl.BlockSpec((1, C), lambda i, k: (0, 0)),
                pl.BlockSpec((1, C), lambda i, k: (0, 0)),
                pl.BlockSpec((C, th_eff), lambda i, k: (0, k)),
                pl.BlockSpec((1, th_eff), lambda i, k: (0, k)),
                pl.BlockSpec((th_eff, C), lambda i, k: (k, 0)),
                pl.BlockSpec((1, C), lambda i, k: (0, 0)),
            ],
            out_specs=pl.BlockSpec((tm_eff, C), lambda i, k: (i, 0)),
            scratch_shapes=[pltpu.VMEM((tm_eff, C), jnp.float32),
                            pltpu.VMEM((tm_eff, C), jnp.bfloat16)],
        ),
        compiler_params=pltpu.CompilerParams(
            dimension_semantics=("parallel", "arbitrary"),
            vmem_limit_bytes=vmem),
    )(x2, blk["ln2_g"], blk["ln2_b"], blk["w1"], blk["b1"], blk["w2"], blk["b2"])
    return out2[:M].reshape(B, T, C)


def classifier_head(pooled, head):
    """pooled: (B, C) f32 -> logits (B, n_output) f32. Lane-dense padded output."""
    B, C = pooled.shape
    H = head["w1"].shape[1]
    n_out = head["w2"].shape[1]
    rows = _round_up(B, 8)
    n_out_pad = _round_up(n_out, 128)

    xp = jnp.pad(pooled, ((0, rows - B), (0, 0)))
    w2p = jnp.pad(head["w2"], ((0, 0), (0, n_out_pad - n_out)))
    b2p = jnp.pad(head["b2"], ((0, 0), (0, n_out_pad - n_out)))

    vmem = _vmem_limit_bytes([
        ((rows, C), jnp.float32), ((C, H), jnp.bfloat16), ((1, H), jnp.float32),
        ((H, n_out_pad), jnp.bfloat16), ((1, n_out_pad), jnp.float32),
        ((rows, n_out_pad), jnp.float32),
    ])
    out = pl.pallas_call(
        _head_kernel,
        out_shape=jax.ShapeDtypeStruct((rows, n_out_pad), jnp.float32),
        grid_spec=pltpu.PrefetchScalarGridSpec(
            num_scalar_prefetch=0,
            grid=(1,),
            in_specs=[
                pl.BlockSpec((rows, C), lambda i: (0, 0)),
                pl.BlockSpec((C, H), lambda i: (0, 0)),
                pl.BlockSpec((1, H), lambda i: (0, 0)),
                pl.BlockSpec((H, n_out_pad), lambda i: (0, 0)),
                pl.BlockSpec((1, n_out_pad), lambda i: (0, 0)),
            ],
            out_specs=pl.BlockSpec((rows, n_out_pad), lambda i: (0, 0)),
        ),
        compiler_params=pltpu.CompilerParams(
            dimension_semantics=("arbitrary",),
            vmem_limit_bytes=vmem),
    )(xp, head["w1"], head["b1"], w2p, b2p)
    return out[:B, :n_out]


def classifier_forward(idx, params, slopes):
    """Full Classifier.forward: returns (logits, [per-layer attention weights])."""
    B, T = idx.shape
    x = jnp.take(params["emb"], idx, axis=0)                # (B, T, C) bf16, via XLA
    alibi = _alibi_bias(slopes, T)
    attention_weights = []
    for blk in params["blocks"]:
        x, aw = attention_layer(x, blk, alibi)              # LN1 + MHA(ALiBi) + residual
        x = ffn_layer(x, blk)                               # LN2 + MLP + residual
        attention_weights.append(aw)                        # (B, nh, T, T) per layer
    pooled = jnp.mean(x.astype(jnp.float32), axis=1)        # torch.mean(x, dim=1)
    logits = classifier_head(pooled, params["head"])
    return logits, attention_weights


# ----------------------------------------------------------------------------- reference
def _layernorm_ref(x, g, b):
    xf = x.astype(jnp.float32)
    mu = jnp.mean(xf, axis=-1, keepdims=True)
    var = jnp.mean(jnp.square(xf - mu), axis=-1, keepdims=True)
    return (xf - mu) * jax.lax.rsqrt(var + LN_EPS) * g + b


def classifier_ref(idx, params, slopes):
    """Pure-JAX reference with the same bf16-storage / f32-accumulate recipe."""
    B, T = idx.shape
    x = jnp.take(params["emb"], idx, axis=0)
    alibi = _alibi_bias(slopes, T)
    attws = []
    for blk in params["blocks"]:
        nh, _, hs = blk["wq"].shape
        xf = x.astype(jnp.float32)
        xn = _layernorm_ref(x, blk["ln1_g"], blk["ln1_b"]).astype(jnp.bfloat16)
        q = jnp.einsum("btc,hcd->bhtd", xn, blk["wq"],
                       preferred_element_type=jnp.float32).astype(jnp.bfloat16)
        k = jnp.einsum("btc,hcd->bhtd", xn, blk["wk"],
                       preferred_element_type=jnp.float32).astype(jnp.bfloat16)
        v = jnp.einsum("btc,hcd->bhtd", xn, blk["wv"],
                       preferred_element_type=jnp.float32).astype(jnp.bfloat16)
        s = jnp.einsum("bhtd,bhsd->bhts", q, k,
                       preferred_element_type=jnp.float32) * (float(hs) ** -0.5)
        s = s + alibi[None]
        s = s - jnp.max(s, axis=-1, keepdims=True)
        p = jnp.exp(s)
        p = p / jnp.sum(p, axis=-1, keepdims=True)
        attws.append(p)
        y = jnp.einsum("bhts,bhsd->bhtd", p.astype(jnp.bfloat16), v,
                       preferred_element_type=jnp.float32).astype(jnp.bfloat16)
        attn_out = jnp.einsum("bhtd,hdc->btc", y, blk["wo"],
                              preferred_element_type=jnp.float32)
        x = (attn_out + blk["bo"] + xf).astype(jnp.bfloat16)

        xf = x.astype(jnp.float32)
        xn = _layernorm_ref(x, blk["ln2_g"], blk["ln2_b"]).astype(jnp.bfloat16)
        h = jnp.einsum("btc,ch->bth", xn, blk["w1"],
                       preferred_element_type=jnp.float32)
        h = jnp.maximum(h + blk["b1"], 0.0).astype(jnp.bfloat16)
        yff = jnp.einsum("bth,hc->btc", h, blk["w2"],
                         preferred_element_type=jnp.float32)
        x = (xf + yff + blk["b2"]).astype(jnp.bfloat16)

    pooled = jnp.mean(x.astype(jnp.float32), axis=1)
    hd = params["head"]
    hc = jnp.dot(pooled.astype(jnp.bfloat16), hd["w1"],
                 preferred_element_type=jnp.float32)
    hc = jnp.maximum(hc + hd["b1"], 0.0)
    logits = jnp.dot(hc.astype(jnp.bfloat16), hd["w2"],
                     preferred_element_type=jnp.float32) + hd["b2"]
    return logits, attws


# ----------------------------------------------------------------------------- params
def init_params(key, *, vocab_size, n_layer, n_embd, n_head, n_hidden, n_output):
    assert n_embd % n_head == 0
    head_size = n_embd // n_head

    def normal(k, shape, dtype=jnp.bfloat16, std=0.05):
        return (std * jax.random.normal(k, shape, jnp.float32)).astype(dtype)

    keys = jax.random.split(key, 4 + n_layer)
    params = {"emb": normal(keys[0], (vocab_size, n_embd))}
    blocks = []
    for li in range(n_layer):
        bk = jax.random.split(keys[4 + li], 13)
        blocks.append(dict(
            ln1_g=1.0 + normal(bk[0], (1, n_embd), jnp.float32, 0.02),
            ln1_b=normal(bk[1], (1, n_embd), jnp.float32, 0.02),
            wq=normal(bk[2], (n_head, n_embd, head_size)),
            wk=normal(bk[3], (n_head, n_embd, head_size)),
            wv=normal(bk[4], (n_head, n_embd, head_size)),
            wo=normal(bk[5], (n_head, head_size, n_embd)),
            bo=normal(bk[6], (1, n_embd), jnp.float32),
            ln2_g=1.0 + normal(bk[7], (1, n_embd), jnp.float32, 0.02),
            ln2_b=normal(bk[8], (1, n_embd), jnp.float32, 0.02),
            w1=normal(bk[9], (n_embd, n_hidden)),
            b1=normal(bk[10], (1, n_hidden), jnp.float32),
            w2=normal(bk[11], (n_hidden, n_embd)),
            b2=normal(bk[12], (1, n_embd), jnp.float32),
        ))
    params["blocks"] = blocks
    params["head"] = dict(
        w1=normal(keys[1], (n_embd, n_hidden)),
        b1=normal(keys[2], (1, n_hidden), jnp.float32),
        w2=normal(keys[3], (n_hidden, n_output)),
        b2=jnp.zeros((1, n_output), jnp.float32),
    )
    return params


# ----------------------------------------------------------------------------- main
if __name__ == "__main__":
    # Small shapes consistent with the module.
    vocab_size, n_layer, n_embd, n_head = 65, 2, 32, 4
    block_size, n_hidden, n_output = 8, 64, 3
    dropout_prob = 0.1           # eval-mode dropout => identity
    B, T = 2, block_size         # n_input == n_embd

    key = jax.random.PRNGKey(0)
    kp, ki = jax.random.split(key)
    params = init_params(kp, vocab_size=vocab_size, n_layer=n_layer,
                         n_embd=n_embd, n_head=n_head, n_hidden=n_hidden,
                         n_output=n_output)
    idx = jax.random.randint(ki, (B, T), 0, vocab_size, dtype=jnp.int32)
    slopes = get_slopes(n_head)

    logits, attws = classifier_forward(idx, params, slopes)
    logits = jax.block_until_ready(logits)

    ref_logits, ref_attws = classifier_ref(idx, params, slopes)

    assert logits.shape == (B, n_output)
    assert len(attws) == n_layer and attws[0].shape == (B, n_head, T, T)
    assert jnp.allclose(logits, ref_logits, atol=5e-3, rtol=5e-3), (
        float(jnp.max(jnp.abs(logits - ref_logits))))
    for a, r in zip(attws, ref_attws):
        assert jnp.allclose(a, r, atol=5e-3, rtol=5e-3)
    assert jnp.allclose(jnp.sum(attws[0], axis=-1), 1.0, atol=1e-3)

    print("KERNEL_OK")
</pallas_src>

<mosaic_0001>
module attributes {stable_mosaic.version = 11 : i64} {
  func.func @kernel(%arg0: i32, %arg1: memref<1x8x32xbf16, #tpu.memory_space<vmem>>, %arg2: memref<1x32xf32, #tpu.memory_space<vmem>>, %arg3: memref<1x32xf32, #tpu.memory_space<vmem>>, %arg4: memref<4x32x8xbf16, #tpu.memory_space<vmem>>, %arg5: memref<4x32x8xbf16, #tpu.memory_space<vmem>>, %arg6: memref<4x32x8xbf16, #tpu.memory_space<vmem>>, %arg7: memref<4x8x32xbf16, #tpu.memory_space<vmem>>, %arg8: memref<1x32xf32, #tpu.memory_space<vmem>>, %arg9: memref<4x8x8xf32, #tpu.memory_space<vmem>>, %arg10: memref<1x8x32xbf16, #tpu.memory_space<vmem>>, %arg11: memref<1x4x8x8xf32, #tpu.memory_space<vmem>>) attributes {dimension_semantics = [#tpu.dimension_semantics<parallel>], iteration_bounds = array<i64: 2>, scalar_prefetch = 0 : i64, scratch_operands = 0 : i64, tpu.core_type = #tpu.core_type<tc>, window_params = [{transform_indices = @transform_0, window_bounds = array<i64: 1, 8, 32>}, {pipeline_mode = #tpu.pipeline_mode<synchronous>, transform_indices = @transform_1, window_bounds = array<i64: 1, 32>}, {pipeline_mode = #tpu.pipeline_mode<synchronous>, transform_indices = @transform_2, window_bounds = array<i64: 1, 32>}, {pipeline_mode = #tpu.pipeline_mode<synchronous>, transform_indices = @transform_3, window_bounds = array<i64: 4, 32, 8>}, {pipeline_mode = #tpu.pipeline_mode<synchronous>, transform_indices = @transform_4, window_bounds = array<i64: 4, 32, 8>}, {pipeline_mode = #tpu.pipeline_mode<synchronous>, transform_indices = @transform_5, window_bounds = array<i64: 4, 32, 8>}, {pipeline_mode = #tpu.pipeline_mode<synchronous>, transform_indices = @transform_6, window_bounds = array<i64: 4, 8, 32>}, {pipeline_mode = #tpu.pipeline_mode<synchronous>, transform_indices = @transform_7, window_bounds = array<i64: 1, 32>}, {pipeline_mode = #tpu.pipeline_mode<synchronous>, transform_indices = @transform_8, window_bounds = array<i64: 4, 8, 8>}, {transform_indices = @transform_9, window_bounds = array<i64: 1, 8, 32>}, {transform_indices = @transform_10, window_bounds = array<i64: 1, 4, 8, 8>}]} {
    %c0 = arith.constant 0 : index
    %c0_0 = arith.constant 0 : index
    %c0_1 = arith.constant 0 : index
    %0 = vector.load %arg1[%c0, %c0_0, %c0_1] : memref<1x8x32xbf16, #tpu.memory_space<vmem>>, vector<1x8x32xbf16>
    %1 = vector.shape_cast %0 : vector<1x8x32xbf16> to vector<8x32xbf16>
    %2 = arith.extf %1 : vector<8x32xbf16> to vector<8x32xf32>
    %cst = arith.constant dense<0.000000e+00> : vector<8xf32>
    %3 = vector.multi_reduction <add>, %2, %cst [1] : vector<8x32xf32> to vector<8xf32>
    %4 = vector.shape_cast %3 : vector<8xf32> to vector<8x1xf32>
    %cst_2 = arith.constant 3.200000e+01 : f32
    %5 = vector.broadcast %cst_2 : f32 to vector<8x1xf32>
    %6 = arith.divf %4, %5 : vector<8x1xf32>
    %7 = vector.broadcast %6 : vector<8x1xf32> to vector<8x32xf32>
    %8 = arith.subf %2, %7 : vector<8x32xf32>
    %9 = arith.mulf %8, %8 : vector<8x32xf32>
    %cst_3 = arith.constant dense<0.000000e+00> : vector<8xf32>
    %10 = vector.multi_reduction <add>, %9, %cst_3 [1] : vector<8x32xf32> to vector<8xf32>
    %11 = vector.shape_cast %10 : vector<8xf32> to vector<8x1xf32>
    %cst_4 = arith.constant 3.200000e+01 : f32
    %12 = vector.broadcast %cst_4 : f32 to vector<8x1xf32>
    %13 = arith.divf %11, %12 : vector<8x1xf32>
    %14 = vector.broadcast %6 : vector<8x1xf32> to vector<8x32xf32>
    %15 = arith.subf %2, %14 : vector<8x32xf32>
    %cst_5 = arith.constant 9.99999974E-6 : f32
    %16 = vector.broadcast %cst_5 : f32 to vector<8x1xf32>
    %17 = arith.addf %13, %16 : vector<8x1xf32>
    %18 = math.rsqrt %17 : vector<8x1xf32>
    %19 = vector.broadcast %18 : vector<8x1xf32> to vector<8x32xf32>
    %20 = arith.mulf %15, %19 : vector<8x32xf32>
    %c0_6 = arith.constant 0 : index
    %c0_7 = arith.constant 0 : index
    %21 = vector.load %arg2[%c0_6, %c0_7] : memref<1x32xf32, #tpu.memory_space<vmem>>, vector<1x32xf32>
    %22 = vector.broadcast %21 : vector<1x32xf32> to vector<8x32xf32>
    %23 = arith.mulf %20, %22 : vector<8x32xf32>
    %c0_8 = arith.constant 0 : index
    %c0_9 = arith.constant 0 : index
    %24 = vector.load %arg3[%c0_8, %c0_9] : memref<1x32xf32, #tpu.memory_space<vmem>>, vector<1x32xf32>
    %25 = vector.broadcast %24 : vector<1x32xf32> to vector<8x32xf32>
    %26 = arith.addf %23, %25 : vector<8x32xf32>
    %27 = arith.truncf %26 : vector<8x32xf32> to vector<8x32xbf16>
    %cst_10 = arith.constant 0.000000e+00 : f32
    %28 = vector.broadcast %cst_10 : f32 to vector<8x32xf32>
    %c0_11 = arith.constant 0 : index
    %c0_12 = arith.constant 0 : index
    %c0_13 = arith.constant 0 : index
    %29 = vector.load %arg4[%c0_11, %c0_12, %c0_13] : memref<4x32x8xbf16, #tpu.memory_space<vmem>>, vector<1x32x8xbf16>
    %30 = vector.shape_cast %29 : vector<1x32x8xbf16> to vector<32x8xbf16>
    %cst_14 = arith.constant dense<0.000000e+00> : vector<8x8xf32>
    %31 = tpu.matmul %27, %30, %cst_14 {dimension_numbers = #tpu.dot_dimension_numbers<[1], [0], [0], [1], [0, 0, 1, 1], [], []>} : vector<8x32xbf16>, vector<32x8xbf16>, vector<8x8xf32> -> vector<8x8xf32>
    %c0_15 = arith.constant 0 : index
    %c0_16 = arith.constant 0 : index
    %c0_17 = arith.constant 0 : index
    %32 = vector.load %arg5[%c0_15, %c0_16, %c0_17] : memref<4x32x8xbf16, #tpu.memory_space<vmem>>, vector<1x32x8xbf16>
    %33 = vector.shape_cast %32 : vector<1x32x8xbf16> to vector<32x8xbf16>
    %cst_18 = arith.constant dense<0.000000e+00> : vector<8x8xf32>
    %34 = tpu.matmul %27, %33, %cst_18 {dimension_numbers = #tpu.dot_dimension_numbers<[1], [0], [0], [1], [0, 0, 1, 1], [], []>} : vector<8x32xbf16>, vector<32x8xbf16>, vector<8x8xf32> -> vector<8x8xf32>
    %c0_19 = arith.constant 0 : index
    %c0_20 = arith.constant 0 : index
    %c0_21 = arith.constant 0 : index
    %35 = vector.load %arg6[%c0_19, %c0_20, %c0_21] : memref<4x32x8xbf16, #tpu.memory_space<vmem>>, vector<1x32x8xbf16>
    %36 = vector.shape_cast %35 : vector<1x32x8xbf16> to vector<32x8xbf16>
    %cst_22 = arith.constant dense<0.000000e+00> : vector<8x8xf32>
    %37 = tpu.matmul %27, %36, %cst_22 {dimension_numbers = #tpu.dot_dimension_numbers<[1], [0], [0], [1], [0, 0, 1, 1], [], []>} : vector<8x32xbf16>, vector<32x8xbf16>, vector<8x8xf32> -> vector<8x8xf32>
    %38 = arith.truncf %31 : vector<8x8xf32> to vector<8x8xbf16>
    %39 = arith.truncf %34 : vector<8x8xf32> to vector<8x8xbf16>
    %cst_23 = arith.constant dense<0.000000e+00> : vector<8x8xf32>
    %40 = tpu.matmul %38, %39, %cst_23 {dimension_numbers = #tpu.dot_dimension_numbers<[1], [1], [0], [0], [0, 0, 1, 0], [], []>} : vector<8x8xbf16>, vector<8x8xbf16>, vector<8x8xf32> -> vector<8x8xf32>
    %cst_24 = arith.constant 0.353553385 : f32
    %41 = vector.broadcast %cst_24 : f32 to vector<8x8xf32>
    %42 = arith.mulf %40, %41 : vector<8x8xf32>
    %c0_25 = arith.constant 0 : index
    %c0_26 = arith.constant 0 : index
    %c0_27 = arith.constant 0 : index
    %43 = vector.load %arg9[%c0_25, %c0_26, %c0_27] : memref<4x8x8xf32, #tpu.memory_space<vmem>>, vector<1x8x8xf32>
    %44 = vector.shape_cast %43 : vector<1x8x8xf32> to vector<8x8xf32>
    %45 = arith.addf %42, %44 : vector<8x8xf32>
    %cst_28 = arith.constant dense<0xFF800000> : vector<8xf32>
    %46 = vector.multi_reduction <maximumf>, %45, %cst_28 [1] : vector<8x8xf32> to vector<8xf32>
    %47 = vector.shape_cast %46 : vector<8xf32> to vector<8x1xf32>
    %48 = vector.broadcast %47 : vector<8x1xf32> to vector<8x8xf32>
    %49 = arith.subf %45, %48 : vector<8x8xf32>
    %50 = math.exp %49 : vector<8x8xf32>
    %cst_29 = arith.constant dense<0.000000e+00> : vector<8xf32>
    %51 = vector.multi_reduction <add>, %50, %cst_29 [1] : vector<8x8xf32> to vector<8xf32>
    %52 = vector.shape_cast %51 : vector<8xf32> to vector<8x1xf32>
    %53 = vector.broadcast %52 : vector<8x1xf32> to vector<8x8xf32>
    %54 = arith.divf %50, %53 : vector<8x8xf32>
    %c0_30 = arith.constant 0 : index
    %c0_31 = arith.constant 0 : index
    %c0_32 = arith.constant 0 : index
    %c0_33 = arith.constant 0 : index
    %55 = vector.load %arg11[%c0_30, %c0_31, %c0_32, %c0_33] : memref<1x4x8x8xf32, #tpu.memory_space<vmem>>, vector<1x1x8x8xf32>
    %56 = vector.shape_cast %55 : vector<1x1x8x8xf32> to vector<8x8xf32>
    %57 = vector.shape_cast %54 : vector<8x8xf32> to vector<1x1x8x8xf32>
    tpu.vector_store %arg11[%c0_30, %c0_31, %c0_32, %c0_33], %57 {strides = array<i32>} : memref<1x4x8x8xf32, #tpu.memory_space<vmem>>, vector<1x1x8x8xf32>,
    %58 = arith.truncf %54 : vector<8x8xf32> to vector<8x8xbf16>
    %59 = arith.truncf %37 : vector<8x8xf32> to vector<8x8xbf16>
    %cst_34 = arith.constant dense<0.000000e+00> : vector<8x8xf32>
    %60 = tpu.matmul %58, %59, %cst_34 {dimension_numbers = #tpu.dot_dimension_numbers<[1], [0], [0], [1], [0, 0, 1, 1], [], []>} : vector<8x8xbf16>, vector<8x8xbf16>, vector<8x8xf32> -> vector<8x8xf32>
    %61 = arith.truncf %60 : vector<8x8xf32> to vector<8x8xbf16>
    %c0_35 = arith.constant 0 : index
    %c0_36 = arith.constant 0 : index
    %c0_37 = arith.constant 0 : index
    %62 = vector.load %arg7[%c0_35, %c0_36, %c0_37] : memref<4x8x32xbf16, #tpu.memory_space<vmem>>, vector<1x8x32xbf16>
    %63 = vector.shape_cast %62 : vector<1x8x32xbf16> to vector<8x32xbf16>
    %cst_38 = arith.constant dense<0.000000e+00> : vector<8x32xf32>
    %64 = tpu.matmul %61, %63, %cst_38 {dimension_numbers = #tpu.dot_dimension_numbers<[1], [0], [0], [1], [0, 0, 1, 1], [], []>} : vector<8x8xbf16>, vector<8x32xbf16>, vector<8x32xf32> -> vector<8x32xf32>
    %65 = arith.addf %28, %64 : vector<8x32xf32>
    %c1 = arith.constant 1 : index
    %c0_39 = arith.constant 0 : index
    %c0_40 = arith.constant 0 : index
    %66 = vector.load %arg4[%c1, %c0_39, %c0_40] : memref<4x32x8xbf16, #tpu.memory_space<vmem>>, vector<1x32x8xbf16>
    %67 = vector.shape_cast %66 : vector<1x32x8xbf16> to vector<32x8xbf16>
    %cst_41 = arith.constant dense<0.000000e+00> : vector<8x8xf32>
    %68 = tpu.matmul %27, %67, %cst_41 {dimension_numbers = #tpu.dot_dimension_numbers<[1], [0], [0], [1], [0, 0, 1, 1], [], []>} : vector<8x32xbf16>, vector<32x8xbf16>, vector<8x8xf32> -> vector<8x8xf32>
    %c1_42 = arith.constant 1 : index
    %c0_43 = arith.constant 0 : index
    %c0_44 = arith.constant 0 : index
    %69 = vector.load %arg5[%c1_42, %c0_43, %c0_44] : memref<4x32x8xbf16, #tpu.memory_space<vmem>>, vector<1x32x8xbf16>
    %70 = vector.shape_cast %69 : vector<1x32x8xbf16> to vector<32x8xbf16>
    %cst_45 = arith.constant dense<0.000000e+00> : vector<8x8xf32>
    %71 = tpu.matmul %27, %70, %cst_45 {dimension_numbers = #tpu.dot_dimension_numbers<[1], [0], [0], [1], [0, 0, 1, 1], [], []>} : vector<8x32xbf16>, vector<32x8xbf16>, vector<8x8xf32> -> vector<8x8xf32>
    %c1_46 = arith.constant 1 : index
    %c0_47 = arith.constant 0 : index
    %c0_48 = arith.constant 0 : index
    %72 = vector.load %arg6[%c1_46, %c0_47, %c0_48] : memref<4x32x8xbf16, #tpu.memory_space<vmem>>, vector<1x32x8xbf16>
    %73 = vector.shape_cast %72 : vector<1x32x8xbf16> to vector<32x8xbf16>
    %cst_49 = arith.constant dense<0.000000e+00> : vector<8x8xf32>
    %74 = tpu.matmul %27, %73, %cst_49 {dimension_numbers = #tpu.dot_dimension_numbers<[1], [0], [0], [1], [0, 0, 1, 1], [], []>} : vector<8x32xbf16>, vector<32x8xbf16>, vector<8x8xf32> -> vector<8x8xf32>
    %75 = arith.truncf %68 : vector<8x8xf32> to vector<8x8xbf16>
    %76 = arith.truncf %71 : vector<8x8xf32> to vector<8x8xbf16>
    %cst_50 = arith.constant dense<0.000000e+00> : vector<8x8xf32>
    %77 = tpu.matmul %75, %76, %cst_50 {dimension_numbers = #tpu.dot_dimension_numbers<[1], [1], [0], [0], [0, 0, 1, 0], [], []>} : vector<8x8xbf16>, vector<8x8xbf16>, vector<8x8xf32> -> vector<8x8xf32>
    %cst_51 = arith.constant 0.353553385 : f32
    %78 = vector.broadcast %cst_51 : f32 to vector<8x8xf32>
    %79 = arith.mulf %77, %78 : vector<8x8xf32>
    %c1_52 = arith.constant 1 : index
    %c0_53 = arith.constant 0 : index
    %c0_54 = arith.constant 0 : index
    %80 = vector.load %arg9[%c1_52, %c0_53, %c0_54] : memref<4x8x8xf32, #tpu.memory_space<vmem>>, vector<1x8x8xf32>
    %81 = vector.shape_cast %80 : vector<1x8x8xf32> to vector<8x8xf32>
    %82 = arith.addf %79, %81 : vector<8x8xf32>
    %cst_55 = arith.constant dense<0xFF800000> : vector<8xf32>
    %83 = vector.multi_reduction <maximumf>, %82, %cst_55 [1] : vector<8x8xf32> to vector<8xf32>
    %84 = vector.shape_cast %83 : vector<8xf32> to vector<8x1xf32>
    %85 = vector.broadcast %84 : vector<8x1xf32> to vector<8x8xf32>
    %86 = arith.subf %82, %85 : vector<8x8xf32>
    %87 = math.exp %86 : vector<8x8xf32>
    %cst_56 = arith.constant dense<0.000000e+00> : vector<8xf32>
    %88 = vector.multi_reduction <add>, %87, %cst_56 [1] : vector<8x8xf32> to vector<8xf32>
    %89 = vector.shape_cast %88 : vector<8xf32> to vector<8x1xf32>
    %90 = vector.broadcast %89 : vector<8x1xf32> to vector<8x8xf32>
    %91 = arith.divf %87, %90 : vector<8x8xf32>
    %c0_57 = arith.constant 0 : index
    %c1_58 = arith.constant 1 : index
    %c0_59 = arith.constant 0 : index
    %c0_60 = arith.constant 0 : index
    %92 = vector.load %arg11[%c0_57, %c1_58, %c0_59, %c0_60] : memref<1x4x8x8xf32, #tpu.memory_space<vmem>>, vector<1x1x8x8xf32>
    %93 = vector.shape_cast %92 : vector<1x1x8x8xf32> to vector<8x8xf32>
    %94 = vector.shape_cast %91 : vector<8x8xf32> to vector<1x1x8x8xf32>
    tpu.vector_store %arg11[%c0_57, %c1_58, %c0_59, %c0_60], %94 {strides = array<i32>} : memref<1x4x8x8xf32, #tpu.memory_space<vmem>>, vector<1x1x8x8xf32>,
    %95 = arith.truncf %91 : vector<8x8xf32> to vector<8x8xbf16>
    %96 = arith.truncf %74 : vector<8x8xf32> to vector<8x8xbf16>
    %cst_61 = arith.constant dense<0.000000e+00> : vector<8x8xf32>
    %97 = tpu.matmul %95, %96, %cst_61 {dimension_numbers = #tpu.dot_dimension_numbers<[1], [0], [0], [1], [0, 0, 1, 1], [], []>} : vector<8x8xbf16>, vector<8x8xbf16>, vector<8x8xf32> -> vector<8x8xf32>
    %98 = arith.truncf %97 : vector<8x8xf32> to vector<8x8xbf16>
    %c1_62 = arith.constant 1 : index
    %c0_63 = arith.constant 0 : index
    %c0_64 = arith.constant 0 : index
    %99 = vector.load %arg7[%c1_62, %c0_63, %c0_64] : memref<4x8x32xbf16, #tpu.memory_space<vmem>>, vector<1x8x32xbf16>
    %100 = vector.shape_cast %99 : vector<1x8x32xbf16> to vector<8x32xbf16>
    %cst_65 = arith.constant dense<0.000000e+00> : vector<8x32xf32>
    %101 = tpu.matmul %98, %100, %cst_65 {dimension_numbers = #tpu.dot_dimension_numbers<[1], [0], [0], [1], [0, 0, 1, 1], [], []>} : vector<8x8xbf16>, vector<8x32xbf16>, vector<8x32xf32> -> vector<8x32xf32>
    %102 = arith.addf %65, %101 : vector<8x32xf32>
    %c2 = arith.constant 2 : index
    %c0_66 = arith.constant 0 : index
    %c0_67 = arith.constant 0 : index
    %103 = vector.load %arg4[%c2, %c0_66, %c0_67] : memref<4x32x8xbf16, #tpu.memory_space<vmem>>, vector<1x32x8xbf16>
    %104 = vector.shape_cast %103 : vector<1x32x8xbf16> to vector<32x8xbf16>
    %cst_68 = arith.constant dense<0.000000e+00> : vector<8x8xf32>
    %105 = tpu.matmul %27, %104, %cst_68 {dimension_numbers = #tpu.dot_dimension_numbers<[1], [0], [0], [1], [0, 0, 1, 1], [], []>} : vector<8x32xbf16>, vector<32x8xbf16>, vector<8x8xf32> -> vector<8x8xf32>
    %c2_69 = arith.constant 2 : index
    %c0_70 = arith.constant 0 : index
    %c0_71 = arith.constant 0 : index
    %106 = vector.load %arg5[%c2_69, %c0_70, %c0_71] : memref<4x32x8xbf16, #tpu.memory_space<vmem>>, vector<1x32x8xbf16>
    %107 = vector.shape_cast %106 : vector<1x32x8xbf16> to vector<32x8xbf16>
    %cst_72 = arith.constant dense<0.000000e+00> : vector<8x8xf32>
    %108 = tpu.matmul %27, %107, %cst_72 {dimension_numbers = #tpu.dot_dimension_numbers<[1], [0], [0], [1], [0, 0, 1, 1], [], []>} : vector<8x32xbf16>, vector<32x8xbf16>, vector<8x8xf32> -> vector<8x8xf32>
    %c2_73 = arith.constant 2 : index
    %c0_74 = arith.constant 0 : index
    %c0_75 = arith.constant 0 : index
    %109 = vector.load %arg6[%c2_73, %c0_74, %c0_75] : memref<4x32x8xbf16, #tpu.memory_space<vmem>>, vector<1x32x8xbf16>
    %110 = vector.shape_cast %109 : vector<1x32x8xbf16> to vector<32x8xbf16>
    %cst_76 = arith.constant dense<0.000000e+00> : vector<8x8xf32>
    %111 = tpu.matmul %27, %110, %cst_76 {dimension_numbers = #tpu.dot_dimension_numbers<[1], [0], [0], [1], [0, 0, 1, 1], [], []>} : vector<8x32xbf16>, vector<32x8xbf16>, vector<8x8xf32> -> vector<8x8xf32>
    %112 = arith.truncf %105 : vector<8x8xf32> to vector<8x8xbf16>
    %113 = arith.truncf %108 : vector<8x8xf32> to vector<8x8xbf16>
    %cst_77 = arith.constant dense<0.000000e+00> : vector<8x8xf32>
    %114 = tpu.matmul %112, %113, %cst_77 {dimension_numbers = #tpu.dot_dimension_numbers<[1], [1], [0], [0], [0, 0, 1, 0], [], []>} : vector<8x8xbf16>, vector<8x8xbf16>, vector<8x8xf32> -> vector<8x8xf32>
    %cst_78 = arith.constant 0.353553385 : f32
    %115 = vector.broadcast %cst_78 : f32 to vector<8x8xf32>
    %116 = arith.mulf %114, %115 : vector<8x8xf32>
    %c2_79 = arith.constant 2 : index
    %c0_80 = arith.constant 0 : index
    %c0_81 = arith.constant 0 : index
    %117 = vector.load %arg9[%c2_79, %c0_80, %c0_81] : memref<4x8x8xf32, #tpu.memory_space<vmem>>, vector<1x8x8xf32>
    %118 = vector.shape_cast %117 : vector<1x8x8xf32> to vector<8x8xf32>
    %119 = arith.addf %116, %118 : vector<8x8xf32>
    %cst_82 = arith.constant dense<0xFF800000> : vector<8xf32>
    %120 = vector.multi_reduction <maximumf>, %119, %cst_82 [1] : vector<8x8xf32> to vector<8xf32>
    %121 = vector.shape_cast %120 : vector<8xf32> to vector<8x1xf32>
    %122 = vector.broadcast %121 : vector<8x1xf32> to vector<8x8xf32>
    %123 = arith.subf %119, %122 : vector<8x8xf32>
    %124 = math.exp %123 : vector<8x8xf32>
    %cst_83 = arith.constant dense<0.000000e+00> : vector<8xf32>
    %125 = vector.multi_reduction <add>, %124, %cst_83 [1] : vector<8x8xf32> to vector<8xf32>
    %126 = vector.shape_cast %125 : vector<8xf32> to vector<8x1xf32>
    %127 = vector.broadcast %126 : vector<8x1xf32> to vector<8x8xf32>
    %128 = arith.divf %124, %127 : vector<8x8xf32>
    %c0_84 = arith.constant 0 : index
    %c2_85 = arith.constant 2 : index
    %c0_86 = arith.constant 0 : index
    %c0_87 = arith.constant 0 : index
    %129 = vector.load %arg11[%c0_84, %c2_85, %c0_86, %c0_87] : memref<1x4x8x8xf32, #tpu.memory_space<vmem>>, vector<1x1x8x8xf32>
    %130 = vector.shape_cast %129 : vector<1x1x8x8xf32> to vector<8x8xf32>
    %131 = vector.shape_cast %128 : vector<8x8xf32> to vector<1x1x8x8xf32>
    tpu.vector_store %arg11[%c0_84, %c2_85, %c0_86, %c0_87], %131 {strides = array<i32>} : memref<1x4x8x8xf32, #tpu.memory_space<vmem>>, vector<1x1x8x8xf32>,
    %132 = arith.truncf %128 : vector<8x8xf32> to vector<8x8xbf16>
    %133 = arith.truncf %111 : vector<8x8xf32> to vector<8x8xbf16>
    %cst_88 = arith.constant dense<0.000000e+00> : vector<8x8xf32>
    %134 = tpu.matmul %132, %133, %cst_88 {dimension_numbers = #tpu.dot_dimension_numbers<[1], [0], [0], [1], [0, 0, 1, 1], [], []>} : vector<8x8xbf16>, vector<8x8xbf16>, vector<8x8xf32> -> vector<8x8xf32>
    %135 = arith.truncf %134 : vector<8x8xf32> to vector<8x8xbf16>
    %c2_89 = arith.constant 2 : index
    %c0_90 = arith.constant 0 : index
    %c0_91 = arith.constant 0 : index
    %136 = vector.load %arg7[%c2_89, %c0_90, %c0_91] : memref<4x8x32xbf16, #tpu.memory_space<vmem>>, vector<1x8x32xbf16>
    %137 = vector.shape_cast %136 : vector<1x8x32xbf16> to vector<8x32xbf16>
    %cst_92 = arith.constant dense<0.000000e+00> : vector<8x32xf32>
    %138 = tpu.matmul %135, %137, %cst_92 {dimension_numbers = #tpu.dot_dimension_numbers<[1], [0], [0], [1], [0, 0, 1, 1], [], []>} : vector<8x8xbf16>, vector<8x32xbf16>, vector<8x32xf32> -> vector<8x32xf32>
    %139 = arith.addf %102, %138 : vector<8x32xf32>
    %c3 = arith.constant 3 : index
    %c0_93 = arith.constant 0 : index
    %c0_94 = arith.constant 0 : index
    %140 = vector.load %arg4[%c3, %c0_93, %c0_94] : memref<4x32x8xbf16, #tpu.memory_space<vmem>>, vector<1x32x8xbf16>
    %141 = vector.shape_cast %140 : vector<1x32x8xbf16> to vector<32x8xbf16>
    %cst_95 = arith.constant dense<0.000000e+00> : vector<8x8xf32>
    %142 = tpu.matmul %27, %141, %cst_95 {dimension_numbers = #tpu.dot_dimension_numbers<[1], [0], [0], [1], [0, 0, 1, 1], [], []>} : vector<8x32xbf16>, vector<32x8xbf16>, vector<8x8xf32> -> vector<8x8xf32>
    %c3_96 = arith.constant 3 : index
    %c0_97 = arith.constant 0 : index
    %c0_98 = arith.constant 0 : index
    %143 = vector.load %arg5[%c3_96, %c0_97, %c0_98] : memref<4x32x8xbf16, #tpu.memory_space<vmem>>, vector<1x32x8xbf16>
    %144 = vector.shape_cast %143 : vector<1x32x8xbf16> to vector<32x8xbf16>
    %cst_99 = arith.constant dense<0.000000e+00> : vector<8x8xf32>
    %145 = tpu.matmul %27, %144, %cst_99 {dimension_numbers = #tpu.dot_dimension_numbers<[1], [0], [0], [1], [0, 0, 1, 1], [], []>} : vector<8x32xbf16>, vector<32x8xbf16>, vector<8x8xf32> -> vector<8x8xf32>
    %c3_100 = arith.constant 3 : index
    %c0_101 = arith.constant 0 : index
    %c0_102 = arith.constant 0 : index
    %146 = vector.load %arg6[%c3_100, %c0_101, %c0_102] : memref<4x32x8xbf16, #tpu.memory_space<vmem>>, vector<1x32x8xbf16>
    %147 = vector.shape_cast %146 : vector<1x32x8xbf16> to vector<32x8xbf16>
    %cst_103 = arith.constant dense<0.000000e+00> : vector<8x8xf32>
    %148 = tpu.matmul %27, %147, %cst_103 {dimension_numbers = #tpu.dot_dimension_numbers<[1], [0], [0], [1], [0, 0, 1, 1], [], []>} : vector<8x32xbf16>, vector<32x8xbf16>, vector<8x8xf32> -> vector<8x8xf32>
    %149 = arith.truncf %142 : vector<8x8xf32> to vector<8x8xbf16>
    %150 = arith.truncf %145 : vector<8x8xf32> to vector<8x8xbf16>
    %cst_104 = arith.constant dense<0.000000e+00> : vector<8x8xf32>
    %151 = tpu.matmul %149, %150, %cst_104 {dimension_numbers = #tpu.dot_dimension_numbers<[1], [1], [0], [0], [0, 0, 1, 0], [], []>} : vector<8x8xbf16>, vector<8x8xbf16>, vector<8x8xf32> -> vector<8x8xf32>
    %cst_105 = arith.constant 0.353553385 : f32
    %152 = vector.broadcast %cst_105 : f32 to vector<8x8xf32>
    %153 = arith.mulf %151, %152 : vector<8x8xf32>
    %c3_106 = arith.constant 3 : index
    %c0_107 = arith.constant 0 : index
    %c0_108 = arith.constant 0 : index
    %154 = vector.load %arg9[%c3_106, %c0_107, %c0_108] : memref<4x8x8xf32, #tpu.memory_space<vmem>>, vector<1x8x8xf32>
    %155 = vector.shape_cast %154 : vector<1x8x8xf32> to vector<8x8xf32>
    %156 = arith.addf %153, %155 : vector<8x8xf32>
    %cst_109 = arith.constant dense<0xFF800000> : vector<8xf32>
    %157 = vector.multi_reduction <maximumf>, %156, %cst_109 [1] : vector<8x8xf32> to vector<8xf32>
    %158 = vector.shape_cast %157 : vector<8xf32> to vector<8x1xf32>
    %159 = vector.broadcast %158 : vector<8x1xf32> to vector<8x8xf32>
    %160 = arith.subf %156, %159 : vector<8x8xf32>
    %161 = math.exp %160 : vector<8x8xf32>
    %cst_110 = arith.constant dense<0.000000e+00> : vector<8xf32>
    %162 = vector.multi_reduction <add>, %161, %cst_110 [1] : vector<8x8xf32> to vector<8xf32>
    %163 = vector.shape_cast %162 : vector<8xf32> to vector<8x1xf32>
    %164 = vector.broadcast %163 : vector<8x1xf32> to vector<8x8xf32>
    %165 = arith.divf %161, %164 : vector<8x8xf32>
    %c0_111 = arith.constant 0 : index
    %c3_112 = arith.constant 3 : index
    %c0_113 = arith.constant 0 : index
    %c0_114 = arith.constant 0 : index
    %166 = vector.load %arg11[%c0_111, %c3_112, %c0_113, %c0_114] : memref<1x4x8x8xf32, #tpu.memory_space<vmem>>, vector<1x1x8x8xf32>
    %167 = vector.shape_cast %166 : vector<1x1x8x8xf32> to vector<8x8xf32>
    %168 = vector.shape_cast %165 : vector<8x8xf32> to vector<1x1x8x8xf32>
    tpu.vector_store %arg11[%c0_111, %c3_112, %c0_113, %c0_114], %168 {strides = array<i32>} : memref<1x4x8x8xf32, #tpu.memory_space<vmem>>, vector<1x1x8x8xf32>,
    %169 = arith.truncf %165 : vector<8x8xf32> to vector<8x8xbf16>
    %170 = arith.truncf %148 : vector<8x8xf32> to vector<8x8xbf16>
    %cst_115 = arith.constant dense<0.000000e+00> : vector<8x8xf32>
    %171 = tpu.matmul %169, %170, %cst_115 {dimension_numbers = #tpu.dot_dimension_numbers<[1], [0], [0], [1], [0, 0, 1, 1], [], []>} : vector<8x8xbf16>, vector<8x8xbf16>, vector<8x8xf32> -> vector<8x8xf32>
    %172 = arith.truncf %171 : vector<8x8xf32> to vector<8x8xbf16>
    %c3_116 = arith.constant 3 : index
    %c0_117 = arith.constant 0 : index
    %c0_118 = arith.constant 0 : index
    %173 = vector.load %arg7[%c3_116, %c0_117, %c0_118] : memref<4x8x32xbf16, #tpu.memory_space<vmem>>, vector<1x8x32xbf16>
    %174 = vector.shape_cast %173 : vector<1x8x32xbf16> to vector<8x32xbf16>
    %cst_119 = arith.constant dense<0.000000e+00> : vector<8x32xf32>
    %175 = tpu.matmul %172, %174, %cst_119 {dimension_numbers = #tpu.dot_dimension_numbers<[1], [0], [0], [1], [0, 0, 1, 1], [], []>} : vector<8x8xbf16>, vector<8x32xbf16>, vector<8x32xf32> -> vector<8x32xf32>
    %176 = arith.addf %139, %175 : vector<8x32xf32>
    %c0_120 = arith.constant 0 : index
    %c0_121 = arith.constant 0 : index
    %177 = vector.load %arg8[%c0_120, %c0_121] : memref<1x32xf32, #tpu.memory_space<vmem>>, vector<1x32xf32>
    %178 = vector.broadcast %177 : vector<1x32xf32> to vector<8x32xf32>
    %179 = arith.addf %176, %178 : vector<8x32xf32>
    %180 = arith.addf %179, %2 : vector<8x32xf32>
    %181 = arith.truncf %180 : vector<8x32xf32> to vector<8x32xbf16>
    %c0_122 = arith.constant 0 : index
    %c0_123 = arith.constant 0 : index
    %c0_124 = arith.constant 0 : index
    %182 = vector.load %arg10[%c0_122, %c0_123, %c0_124] : memref<1x8x32xbf16, #tpu.memory_space<vmem>>, vector<1x8x32xbf16>
    %183 = vector.shape_cast %182 : vector<1x8x32xbf16> to vector<8x32xbf16>
    %184 = vector.shape_cast %181 : vector<8x32xbf16> to vector<1x8x32xbf16>
    tpu.vector_store %arg10[%c0_122, %c0_123, %c0_124], %184 {strides = array<i32>} : memref<1x8x32xbf16, #tpu.memory_space<vmem>>, vector<1x8x32xbf16>,
    return
  }
  func.func @transform_0(%arg0: i32) -> (i32, i32, i32) {
    %c0_i32 = arith.constant 0 : i32
    %c0_i32_0 = arith.constant 0 : i32
    %c0_i32_1 = arith.constant 0 : i32
    return %arg0, %c0_i32, %c0_i32_0 : i32, i32, i32
  }
  func.func @transform_1(%arg0: i32) -> (i32, i32) {
    %c0_i32 = arith.constant 0 : i32
    %c0_i32_0 = arith.constant 0 : i32
    %c0_i32_1 = arith.constant 0 : i32
    return %c0_i32, %c0_i32_0 : i32, i32
  }
  func.func @transform_2(%arg0: i32) -> (i32, i32) {
    %c0_i32 = arith.constant 0 : i32
    %c0_i32_0 = arith.constant 0 : i32
    %c0_i32_1 = arith.constant 0 : i32
    return %c0_i32, %c0_i32_0 : i32, i32
  }
  func.func @transform_3(%arg0: i32) -> (i32, i32, i32) {
    %c0_i32 = arith.constant 0 : i32
    %c0_i32_0 = arith.constant 0 : i32
    %c0_i32_1 = arith.constant 0 : i32
    %c0_i32_2 = arith.constant 0 : i32
    return %c0_i32, %c0_i32_0, %c0_i32_1 : i32, i32, i32
  }
  func.func @transform_4(%arg0: i32) -> (i32, i32, i32) {
    %c0_i32 = arith.constant 0 : i32
    %c0_i32_0 = arith.constant 0 : i32
    %c0_i32_1 = arith.constant 0 : i32
    %c0_i32_2 = arith.constant 0 : i32
    return %c0_i32, %c0_i32_0, %c0_i32_1 : i32, i32, i32
  }
  func.func @transform_5(%arg0: i32) -> (i32, i32, i32) {
    %c0_i32 = arith.constant 0 : i32
    %c0_i32_0 = arith.constant 0 : i32
    %c0_i32_1 = arith.constant 0 : i32
    %c0_i32_2 = arith.constant 0 : i32
    return %c0_i32, %c0_i32_0, %c0_i32_1 : i32, i32, i32
  }
  func.func @transform_6(%arg0: i32) -> (i32, i32, i32) {
    %c0_i32 = arith.constant 0 : i32
    %c0_i32_0 = arith.constant 0 : i32
    %c0_i32_1 = arith.constant 0 : i32
    %c0_i32_2 = arith.constant 0 : i32
    return %c0_i32, %c0_i32_0, %c0_i32_1 : i32, i32, i32
  }
  func.func @transform_7(%arg0: i32) -> (i32, i32) {
    %c0_i32 = arith.constant 0 : i32
    %c0_i32_0 = arith.constant 0 : i32
    %c0_i32_1 = arith.constant 0 : i32
    return %c0_i32, %c0_i32_0 : i32, i32
  }
  func.func @transform_8(%arg0: i32) -> (i32, i32, i32) {
    %c0_i32 = arith.constant 0 : i32
    %c0_i32_0 = arith.constant 0 : i32
    %c0_i32_1 = arith.constant 0 : i32
    %c0_i32_2 = arith.constant 0 : i32
    return %c0_i32, %c0_i32_0, %c0_i32_1 : i32, i32, i32
  }
  func.func @transform_9(%arg0: i32) -> (i32, i32, i32) {
    %c0_i32 = arith.constant 0 : i32
    %c0_i32_0 = arith.constant 0 : i32
    %c0_i32_1 = arith.constant 0 : i32
    return %arg0, %c0_i32, %c0_i32_0 : i32, i32, i32
  }
  func.func @transform_10(%arg0: i32) -> (i32, i32, i32, i32) {
    %c0_i32 = arith.constant 0 : i32
    %c0_i32_0 = arith.constant 0 : i32
    %c0_i32_1 = arith.constant 0 : i32
    %c0_i32_2 = arith.constant 0 : i32
    return %arg0, %c0_i32, %c0_i32_0, %c0_i32_1 : i32, i32, i32, i32
  }
}

</mosaic_0001>

<bundles_post_ra>
// kernel: tpu_custom_call.1
= control target key start
LH: loop header
LB: loop body
LE: loop exit
PB: predicated region body
PF: predicated region fallthrough
CT: control target
= control target key end

     0   :  { %s2866_s0 = inlined_call_operand.vmem [shape: bf16[2,8,32], index: 0, kind: input, shape index: {}]   ;;  %s2867_s1 = inlined_call_operand.vmem [shape: f32[1,32], index: 1, kind: input, shape index: {}]   ;;  %s2868_s2 = inlined_call_operand.vmem [shape: f32[1,32], index: 2, kind: input, shape index: {}]   ;;  %s2869_s3 = inlined_call_operand.vmem [shape: bf16[4,32,8], index: 3, kind: input, shape index: {}]   ;;  %s2870_s4 = inlined_call_operand.vmem [shape: bf16[4,32,8], index: 4, kind: input, shape index: {}]   ;;  %s2871_s5 = inlined_call_operand.vmem [shape: bf16[4,32,8], index: 5, kind: input, shape index: {}]   ;;  %s2872_s6 = inlined_call_operand.vmem [shape: bf16[4,8,32], index: 6, kind: input, shape index: {}]   ;;  %s2873_s7 = inlined_call_operand.vmem [shape: f32[1,32], index: 7, kind: input, shape index: {}]   ;;  %s2874_s8 = inlined_call_operand.vmem [shape: f32[4,8,8], index: 8, kind: input, shape index: {}]   ;;  %s2875_s9 = inlined_call_operand.hbm [shape: bf16[2,8,32], index: 9, kind: output, shape index: {0}]   ;;  %s2876_s10 = inlined_call_operand.hbm [shape: f32[2,4,8,8], index: 10, kind: output, shape index: {1}]  }
   0x1   :  { %2877 = sst [smem:[#allocation8_spill]] %s2866_s0 }
   0x2   :  { %16 = vsyncpa [#allocation3], 0 }
   0x3   :  { %18 = vsyncpa [#allocation3 + $0x1], 0 }
   0x4   :  { %19 = vsyncpa [#allocation5], 0 }
   0x5   :  { %21 = vsyncpa [#allocation5 + $0x1], 0  ;;  %s2458_s13 = smov 0   ;;  %s2460_s14 = smov 0  }
   0x6   :  { %s2462_s15 = smov 0   ;;  %s2464_s16 = smov 0  }
   0x7 LB: > { %s2479_s17 = sadd.s32 4294967295, %s2395_s16   ;;  %s1872_s18 = sadd.s32 4294967294, %s2395_s16   ;;  %s2395_s16 = sphi %s2464_s16, %s2885_s16   ;;  %s2391_s15 = sphi %s2462_s15, %s2884_s15   ;;  %s2387_s14 = sphi %s2460_s14, %s2883_s14   ;;  %s2383_s13 = sphi %s2458_s13, %s2882_s13  }
   0x8   : > { %s2483_s19 = sadd.s32 1, %s2395_s16   ;;  %s228_s20 = sadd.s32 1, %s2391_s15 }
   0x9   : > { %s225_s21 = ssub.s32 %s2395_s16, %s2483_s19  ;;  %p238_p0 = scmp.ne.s32.totalorder %s2391_s15, %s2387_s14 }
   0xa   : > { %p226_p1 = scmp.eq.s32.totalorder %s225_s21, 0  ;;  %p239_p2 = scmp.eq.s32.totalorder %s2479_s17, 1 }
   0xb   : > { %p244_p3 = scmp.ne.s32.totalorder %s2387_s14, %s2383_s13  ;;  %p245_p4 = scmp.eq.s32.totalorder %s1872_s18, 1 }
   0xc   : > { %s2494_s22 = scalar_select %p226_p1, %s2391_s15, %s228_s20  }
   0xd   : > { %p2496_p5 = por %p239_p2, %p238_p0  ;;  %p2500_p6 = por %p245_p4, %p244_p3 }
   0xe   : > { %p1875_p7 = scmp.ge.s32.totalorder %s2395_s16, 1  ;;  %p320_p8 = scmp.lt.s32.totalorder %s2395_s16, 3 }
  0x10   : > { %p321_p9 = pnand %p1875_p7, %p320_p8 }
  0x11   : > { %p362_p10 = scmp.lt.s32.totalorder (!%p321_p9), %s2479_s17, 1  ;;  %vm369_vm0 = vcmask (!%p321_p9), 261120   ;;  %s2880_s0 = sld [smem:[#allocation8_spill]] (!%p321_p9)  ;;  %v2259_v8 = vld [vmem:[%s2869_s3] sm:$0xff] (!%p321_p9)   ;;  %v2397_v10 = vmov (!%p321_p9), 0.0   ;;  %v2261_v11 = vld [vmem:[%s2869_s3 + $0x8] sm:$0xff] (!%p321_p9)  }
  0x12   : > { %324 = sbr.rel (%p321_p9) target bundleno = 4255 (0x109f), region = 56  ;;  %v2260_v9 = vld [vmem:[%s2870_s4] sm:$0xff] (!%p321_p9)   ;;  %2043 = vmatprep.subr.bf16.mxu0 (!%p321_p9), %v2397_v10  ;;  %2051 = vmatprep.subr.bf16.mxu1 (!%p321_p9), %v2397_v10  ;;  %v2262_v12 = vld [vmem:[%s2870_s4 + $0x8] sm:$0xff] (!%p321_p9)   ;;  %vm2398_vm1 = vmmov (!%p321_p9), 0   ;;  %vm574_vm2 = vcmask (!%p321_p9), 64512   ;;  %vm641_vm3 = vcmask (!%p321_p9), 1043456  }
  0x13   : > { %2044 = vmatpush3.bf16.msra.mxu0 (!%p321_p9), %v2259_v8  ;;  %2052 = vmatpush3.bf16.msra.mxu1 (!%p321_p9), %v2260_v9  ;;  %v1879_v17 = vld [vmem:[%s2867_s1] ss:$0 sm:$0xff] (!%p321_p9)  ;;  %v2264_v24 = vld [vmem:[%s2871_s5 + $0x8] sm:$0xff] (!%p321_p9)   ;;  %v2265_v36 = vld [vmem:[%s2869_s3 + $0x10] sm:$0xff] (!%p321_p9)   ;;  %s2606_s20 = sand.u32 (!%p321_p9), 1, %s2387_s14   ;;  %s1982_s18 = sshll.u32 (!%p321_p9), %s2479_s17, 9 }
  0x14   : > { %2045 = vmatprep.subr.bf16.mxu0 (!%p321_p9), %v2397_v10  ;;  %2053 = vmatprep.subr.bf16.mxu1 (!%p321_p9), %v2397_v10  ;;  %v1880_v19 = vld [vmem:[%s2868_s2] ss:$0 sm:$0xff] (!%p321_p9)  ;;  %v2266_v43 = vld [vmem:[%s2869_s3 + $0x18] sm:$0xff] (!%p321_p9)   ;;  %v2267_v44 = vld [vmem:[%s2871_s5 + $0x10] sm:$0xff] (!%p321_p9)   ;;  %s1877_s21 = sshll.u32 (!%p321_p9), %s2606_s20, 5  ;;  %s2399_s30 = smov (!%p321_p9), [#allocation4]  }
  0x15   : > { %2047 = vmatprep.mubr.msk.bf16.mxu0 (!%p321_p9), %vm2398_vm1, %v2397_v10  ;;  %2055 = vmatprep.mubr.msk.bf16.mxu1 (!%p321_p9), %vm2398_vm1, %v2397_v10  ;;  %v2263_v22 = vld [vmem:[%s2871_s5] sm:$0xff] (!%p321_p9)   ;;  %v2268_v45 = vld [vmem:[%s2871_s5 + $0x18] sm:$0xff] (!%p321_p9)   ;;  %v2269_v9 = vld [vmem:[%s2870_s4 + $0x10] sm:$0xff] (!%p321_p9)   ;;  %s2612_s27 = scalar_lea.vmem (!%p321_p9), [#allocation4], %s1877_s21  ;;  %s2305_s11 = sshll.u32 (!%p321_p9), %s2399_s30, 4  ;;  %s2306_s11 = int_to_ptr.vmem [resolvable:$false] %s2305_s11 }
  0x16   : > { %v622_v47 = vld [vmem:[%s2874_s8] sm:$0xff] (!%p321_p9)  ;;  %s1778_s12 = sshll.u32 (!%p321_p9), %s2612_s27, 4  ;;  %s2782_s12 = int_to_ptr.vmem [resolvable:$true] %s1778_s12 }
  0x17   : > { %2046 = vmatpush3.bf16.msra.mxu0 (!%p321_p9), %v2261_v11  ;;  %2054 = vmatpush3.bf16.msra.mxu1 (!%p321_p9), %v2262_v12  ;;  %v2270_v12 = vld [vmem:[%s2870_s4 + $0x18] sm:$0xff] (!%p321_p9)   ;;  %p2308_p0 = scmp.lt.s32.totalorder (!%p321_p9), %s2782_s12, %s2306_s11 }
  0x18   : > { %2059 = vmatprep.subr.bf16.mxu0 (!%p321_p9), %v2397_v10  ;;  %2067 = vmatprep.subr.bf16.mxu1 (!%p321_p9), %v2397_v10 }
  0x19   : > { %s363_s25 = scalar_select %p362_p10, %s2479_s17, 1 }
  0x1b   : > { %s1878_s26 = sshll.u32 %s363_s25, 2 }
  0x1c   : > { %s365_s29 = scalar_lea.vmem %s2880_s0, %s1878_s26  ;;  %s2787_s26 = scalar_lea.hbm %s2876_s10, %s1982_s18 }
  0x1d   : > { %v367_v0 = vld [vmem:[%s365_s29] sm:$0xf]  ;;  %s2301_s29 = scalar_lea.vmem %s2782_s12, 512 }
  0x1e   : > { %v2511_v1 = vunpack.c.l.bf16 %v367_v0  ;;  %p2302_p11 = scmp.ne.s32.totalorder %s2782_s12, %s2301_s29 }
  0x20   : > { %v370_v2 = vsel %vm369_vm0, %v2511_v1, 0.0  ;;  %p2303_p12 = pnand %p2302_p11, %p2496_p5 }
  0x21   : > { %371 = vadd.xlane.f32.xlu0 %v370_v2 }
  0x22   : > { %p2304_p13 = pneg %p2303_p12 }
  0xae   : > { %v372_v3 = vpop.xlane.xlu0 %371 }
  0xaf   : > { %v374_v4 = vmul.f32 0.03125, %v372_v3 }
  0xb1   : > { %v375_v5 = vsub.f32 %v2511_v1, %v374_v4 }
  0xb3   : > { %v376_v6 = vmul.f32 %v375_v5, %v375_v5 }
  0xb5   : > { %v377_v7 = vsel %vm369_vm0, %v376_v6, 0.0 }
  0xb6   : > { %378 = vadd.xlane.f32.xlu0 %v377_v7 }
 0x143   : > { %v379_v13 = vpop.xlane.xlu0 %378 }
 0x144   : > { %v380_v14 = vmul.f32 0.03125, %v379_v13 }
 0x146   : > { %v381_v15 = vadd.f32 1e-05, %v380_v14 }
 0x148   : > { %2283 = vrsqrt.f32 %v381_v15 }
 0x152   : > { %v2284_v16 = vpop.eup %2283 }
 0x153   : > { %v383_v18 = vmul.f32 %v2284_v16, %v375_v5 }
 0x155   : > { %v391_v20 = vmul.f32 %v1879_v17, %v383_v18 }
 0x157   : > { %v399_v21 = vadd.f32 %v1880_v19, %v391_v20 }
 0x159   : > { %v2548_v23 = vpack.c.bf16 %v399_v21, %v399_v21 }
 0x15b   : > { %2048 = vmatmul.mubr.msk.bf16.vlgmr.msra.gmra.mrb[0].mxu0 %vm369_vm0, %v2548_v23  ;;  %2056 = vmatmul.mubr.msk.bf16.vlgmr.msra.gmra.mrb[0].mxu1 %vm369_vm0, %v2548_v23 }
 0x15c   : > { %2060 = vmatpush3.bf16.msra.mxu0 %v2263_v22  ;;  %2063 = vmatprep.mubr.msk.bf16.mxu0 %vm2398_vm1, %v2397_v10 }
 0x15d   : > { %2061 = vmatprep.subr.bf16.mxu0 %v2397_v10  ;;  %2069 = vmatprep.mubr.msk.bf16.mxu1 %vm2398_vm1, %v2397_v10 }
 0x160   : > { %2062 = vmatpush3.bf16.msra.mxu0 %v2264_v24 }
 0x161   : > { %2073 = vmatprep.subr.bf16.mxu0 %v2397_v10 }
 0x163   : > { %2064 = vmatmul.mubr.msk.bf16.vlgmr.msra.gmra.mrb[4].mxu0 %vm369_vm0, %v2548_v23 }
 0x164   : > { %2075 = vmatprep.mubr.msk.bf16.mxu0 %vm2398_vm1, %v2397_v10 }
 0x22e   : > { %v454_v25 = vpop.f32.mrb[0].mxu0  ;;  %v510_v26 = vpop.f32.mrb[0].mxu1 }
 0x22f   : > { %v573_v27 = vpack.c.bf16 %v510_v26, %v510_v26  ;;  %v2049_v28 = vpop.f32.mrb[1].mxu0  ;;  %v2057_v29 = vpop.f32.mrb[1].mxu1  ;;  %v572_v37 = vpack.c.bf16 %v454_v25, %v454_v25  ;;  %v1914_v26 = vld [vmem:[%s2874_s8 + $0x8] sm:$0xff] }
 0x230   : > { %v457_v30 = vpop.f32.mrb[2].mxu0  ;;  %v513_v31 = vpop.f32.mrb[2].mxu1 }
 0x231   : > { %v579_v32 = vsel %vm574_vm2, %v573_v27, 0  ;;  %v2050_v33 = vpop.f32.mrb[3].mxu0  ;;  %v2058_v34 = vpop.f32.mrb[3].mxu1 }
 0x232   : > { %2068 = vmatpush3.bf16.xpose.msra.mxu1 %v579_v32 }
 0x233   : > { %2079 = vmatprep.subr.bf16.mxu1 %v2397_v10 }
 0x236   : > { %v566_v35 = vpop.f32.mrb[4].mxu0 }
 0x237   : > { %v637_v38 = vpack.c.bf16 %v566_v35, %v566_v35  ;;  %v2065_v39 = vpop.f32.mrb[5].mxu0 }
 0x238   : > { %v569_v40 = vpop.f32.mrb[6].mxu0 }
 0x239   : > { %v643_v41 = vsel %vm641_vm3, %v637_v38, 0  ;;  %v2066_v42 = vpop.f32.mrb[7].mxu0  ;;  %2070 = vmatmul.mubr.msk.bf16.vlgmr.msra.gmra.mrb[4].mxu1 %vm574_vm2, %v572_v37  ;;  %v1917_v38 = vld [vmem:[%s2872_s6 + $0x4] sm:$0xf] }
 0x23a   : > { %2074 = vmatpush3.bf16.msra.mxu0 %v643_v41  ;;  %2080 = vmatpush3.bf16.msra.mxu1 %v2265_v36  ;;  %v978_v39 = vsel %vm641_vm3, %v1917_v38, 0  ;;  %v686_v42 = vld [vmem:[%s2872_s6] sm:$0xf] }
 0x23b   : > { %2081 = vmatprep.subr.bf16.mxu1 %v2397_v10  ;;  %2083 = vmatprep.mubr.msk.bf16.mxu1 %vm2398_vm1, %v2397_v10 }
 0x23c   : > { %2087 = vmatprep.subr.bf16.mxu0 %v2397_v10 }
 0x23e   : > { %2082 = vmatpush3.bf16.msra.mxu1 %v2266_v43 }
 0x23f   : > { %2095 = vmatprep.subr.bf16.mxu1 %v2397_v10 }
 0x241   : > { %2084 = vmatmul.mubr.msk.bf16.vlgmr.msra.gmra.mrb[8].mxu1 %vm369_vm0, %v2548_v23 }
 0x242   : > { %2096 = vmatpush3.bf16.msra.mxu1 %v2267_v44  ;;  %2099 = vmatprep.mubr.msk.bf16.mxu1 %vm2398_vm1, %v2397_v10 }
 0x243   : > { %2097 = vmatprep.subr.bf16.mxu1 %v2397_v10 }
 0x246   : > { %2098 = vmatpush3.bf16.msra.mxu1 %v2268_v45  ;;  %v1024_v45 = vsel %vm641_vm3, %v686_v42, 0 }
 0x247   : > { %2109 = vmatprep.subr.bf16.mxu1 %v2397_v10 }
 0x249   : > { %2100 = vmatmul.mubr.msk.bf16.vlgmr.msra.gmra.mrb[12].mxu1 %vm369_vm0, %v2548_v23 }
 0x24a   : > { %2111 = vmatprep.mubr.msk.bf16.mxu1 %vm2398_vm1, %v2397_v10 }
 0x30c   : > { %v615_v46 = vpop.f32.mrb[4].mxu1 }
 0x30d   : > { %v621_v48 = vmul.f32 0.35355338, %v615_v46  ;;  %v2071_v49 = vpop.f32.mrb[5].mxu1  ;;  %v2271_v46 = vld [vmem:[%s2870_s4 + $0x20] sm:$0xff]  }
 0x30e   : > { %v618_v50 = vpop.f32.mrb[6].mxu1 }
 0x30f   : > { %v2072_v51 = vpop.f32.mrb[7].mxu1  ;;  %v623_v52 = vadd.f32 %v622_v47, %v621_v48  ;;  %v2272_v48 = vld [vmem:[%s2870_s4 + $0x28] sm:$0xff]   ;;  %v2273_v50 = vld [vmem:[%s2869_s3 + $0x20] sm:$0xff]  }
 0x311   : > { %v624_v53 = vsel %vm574_vm2, %v623_v52, -inf }
 0x312   : > { %625 = vmax.xlane.f32.xlu1 %v624_v53 }
 0x314   : > { %v738_v54 = vpop.f32.mrb[8].mxu1 }
 0x315   : > { %v2085_v55 = vpop.f32.mrb[9].mxu1  ;;  %v858_v24 = vpack.c.bf16 %v738_v54, %v738_v54 }
 0x316   : > { %v741_v56 = vpop.f32.mrb[10].mxu1  ;;  %v2274_v55 = vld [vmem:[%s2869_s3 + $0x28] sm:$0xff]  }
 0x317   : > { %v2086_v57 = vpop.f32.mrb[11].mxu1 }
 0x318   : > { %v2275_v57 = vld [vmem:[%s2871_s5 + $0x20] sm:$0xff]  }
 0x31c   : > { %v852_v58 = vpop.f32.mrb[12].mxu1 }
 0x31d   : > { %v924_v59 = vpack.c.bf16 %v852_v58, %v852_v58  ;;  %v2101_v60 = vpop.f32.mrb[13].mxu1 }
 0x31e   : > { %v855_v61 = vpop.f32.mrb[14].mxu1 }
 0x31f   : > { %v929_v62 = vsel %vm641_vm3, %v924_v59, 0  ;;  %v2102_v63 = vpop.f32.mrb[15].mxu1  ;;  %v2276_v61 = vld [vmem:[%s2871_s5 + $0x28] sm:$0xff]  }
 0x320   : > { %2110 = vmatpush3.bf16.msra.mxu1 %v929_v62 }
 0x321   : > { %2121 = vmatprep.subr.bf16.mxu1 %v2397_v10 }
 0x39f   : > { %v626_v0 = vpop.xlane.xlu1 %625 }
 0x3a0   : > { %v627_v2 = vsub.f32 %v623_v52, %v626_v0 }
 0x3a2   : > { %v628_v3 = vmul.f32 1.442695, %v627_v2 }
 0x3a4   : > { %2285 = vpow2.f32 %v628_v3 }
 0x3ae   : > { %v2286_v4 = vpop.eup %2285 }
 0x3af   : > { %v630_v5 = vsel %vm574_vm2, %v2286_v4, 0.0 }
 0x3b0   : > { %631 = vadd.xlane.f32.xlu1 %v630_v5 }
 0x43d   : > { %v632_v6 = vpop.xlane.xlu1 %631 }
 0x43e   : > { %2287 = vrcp.f32 %v632_v6 }
 0x448   : > { %v2288_v7 = vpop.eup %2287 }
 0x449   : > { %v634_v8 = vmul.f32 %v2288_v7, %v2286_v4 }
 0x44b   : > { %v636_v11 = vpack.c.bf16 %v634_v8, %v634_v8  ;;  %635 = vst.msk [vmem:[%s2612_s27] sm:$0xff] %vm574_vm2, %v634_v8 }
 0x44d   : > { %2076 = vmatmul.mubr.msk.bf16.vlgmr.msra.gmra.mrb[8].mxu0 %vm574_vm2, %v636_v11 }
 0x44e   : > { %2088 = vmatpush3.bf16.msra.mxu0 %v2269_v9  ;;  %2091 = vmatprep.mubr.msk.bf16.mxu0 %vm2398_vm1, %v2397_v10 }
 0x44f   : > { %2089 = vmatprep.subr.bf16.mxu0 %v2397_v10 }
 0x452   : > { %2090 = vmatpush3.bf16.msra.mxu0 %v2270_v12 }
 0x453   : > { %2103 = vmatprep.subr.bf16.mxu0 %v2397_v10 }
 0x455   : > { %2092 = vmatmul.mubr.msk.bf16.vlgmr.msra.gmra.mrb[12].mxu0 %vm369_vm0, %v2548_v23 }
 0x456   : > { %2105 = vmatprep.mubr.msk.bf16.mxu0 %vm2398_vm1, %v2397_v10 }
 0x520   : > { %v679_v13 = vpop.f32.mrb[8].mxu0 }
 0x521   : > { %v2077_v14 = vpop.f32.mrb[9].mxu0  ;;  %v685_v47 = vpack.c.bf16 %v679_v13, %v679_v13 }
 0x522   : > { %v682_v15 = vpop.f32.mrb[10].mxu0 }
 0x523   : > { %v2078_v16 = vpop.f32.mrb[11].mxu0 }
 0x528   : > { %v795_v17 = vpop.f32.mrb[12].mxu0 }
 0x529   : > { %v859_v18 = vpack.c.bf16 %v795_v17, %v795_v17  ;;  %v2093_v19 = vpop.f32.mrb[13].mxu0 }
 0x52a   : > { %v798_v20 = vpop.f32.mrb[14].mxu0 }
 0x52b   : > { %v864_v21 = vsel %vm574_vm2, %v859_v18, 0  ;;  %v2094_v22 = vpop.f32.mrb[15].mxu0 }
 0x52c   : > { %2104 = vmatpush3.bf16.xpose.msra.mxu0 %v864_v21 }
 0x52d   : > { %2115 = vmatprep.subr.bf16.mxu0 %v2397_v10 }
 0x533   : > { %2106 = vmatmul.mubr.msk.bf16.vlgmr.msra.gmra.mrb[16].mxu0 %vm574_vm2, %v858_v24  ;;  %v1942_v24 = vld [vmem:[%s2874_s8 + $0x10] sm:$0xff] }
 0x534   : > { %2117 = vmatprep.mubr.msk.bf16.mxu0 %vm2398_vm1, %v2397_v10  ;;  %2116 = vmatpush3.bf16.msra.mxu0 %v978_v39 }
 0x535   : > { %2127 = vmatprep.subr.bf16.mxu0 %v2397_v10 }
 0x606   : > { %v900_v25 = vpop.f32.mrb[16].mxu0 }
 0x607   : > { %v906_v27 = vmul.f32 0.35355338, %v900_v25  ;;  %v2107_v28 = vpop.f32.mrb[17].mxu0 }
 0x608   : > { %v903_v29 = vpop.f32.mrb[18].mxu0 }
 0x609   : > { %v2108_v30 = vpop.f32.mrb[19].mxu0  ;;  %v909_v31 = vadd.f32 %v1914_v26, %v906_v27 }
 0x60b   : > { %v910_v32 = vsel %vm574_vm2, %v909_v31, -inf }
 0x60c   : > { %911 = vmax.xlane.f32.xlu0 %v910_v32 }
 0x699   : > { %v912_v33 = vpop.xlane.xlu0 %911 }
 0x69a   : > { %v913_v34 = vsub.f32 %v909_v31, %v912_v33 }
 0x69c   : > { %v914_v35 = vmul.f32 1.442695, %v913_v34 }
 0x69e   : > { %2289 = vpow2.f32 %v914_v35 }
 0x6a8   : > { %v2290_v36 = vpop.eup %2289 }
 0x6a9   : > { %v916_v37 = vsel %vm574_vm2, %v2290_v36, 0.0 }
 0x6aa   : > { %917 = vadd.xlane.f32.xlu1 %v916_v37 }
 0x737   : > { %v918_v40 = vpop.xlane.xlu1 %917 }
 0x738   : > { %2291 = vrcp.f32 %v918_v40 }
 0x742   : > { %v2292_v41 = vpop.eup %2291 }
 0x743   : > { %v920_v43 = vmul.f32 %v2292_v41, %v2290_v36  ;;  %v1945_v36 = vld [vmem:[%s2872_s6 + $0x8] sm:$0xf]  ;;  %v2277_v41 = vld [vmem:[%s2869_s3 + $0x30] sm:$0xff]  }
 0x744   : > { %v1357_v37 = vsel %vm641_vm3, %v1945_v36, 0 }
 0x745   : > { %v923_v44 = vpack.c.bf16 %v920_v43, %v920_v43  ;;  %1915 = vst.msk [vmem:[%s2612_s27 + $0x8] sm:$0xff] %vm574_vm2, %v920_v43  ;;  %v2278_v43 = vld [vmem:[%s2869_s3 + $0x38] sm:$0xff]  }
 0x747   : > { %2112 = vmatmul.mubr.msk.bf16.vlgmr.msra.gmra.mrb[16].mxu1 %vm574_vm2, %v923_v44  ;;  %v2279_v44 = vld [vmem:[%s2871_s5 + $0x30] sm:$0xff]  }
 0x748   : > { %2122 = vmatpush3.bf16.msra.mxu1 %v1024_v45  ;;  %2123 = vmatprep.mubr.msk.bf16.mxu1 %vm2398_vm1, %v2397_v10  ;;  %v2280_v45 = vld [vmem:[%s2871_s5 + $0x38] sm:$0xff]  }
 0x749   : > { %2135 = vmatprep.subr.bf16.mxu1 %v2397_v10 }
 0x74f   : > { %2124 = vmatmul.mubr.msk.bf16.vlgmr.msra.gmra.mrb[20].mxu1 %vm574_vm2, %v685_v47  ;;  %v2281_v47 = vld [vmem:[%s2870_s4 + $0x30] sm:$0xff]  }
 0x750   : > { %2136 = vmatpush3.bf16.msra.mxu1 %v2271_v46  ;;  %2139 = vmatprep.mubr.msk.bf16.mxu1 %vm2398_vm1, %v2397_v10 }
 0x751   : > { %2137 = vmatprep.subr.bf16.mxu1 %v2397_v10 }
 0x754   : > { %2138 = vmatpush3.bf16.msra.mxu1 %v2272_v48 }
 0x755   : > { %2151 = vmatprep.subr.bf16.mxu1 %v2397_v10 }
 0x757   : > { %2140 = vmatmul.mubr.msk.bf16.vlgmr.msra.gmra.mrb[24].mxu1 %vm369_vm0, %v2548_v23 }
 0x758   : > { %2153 = vmatprep.mubr.msk.bf16.mxu1 %vm2398_vm1, %v2397_v10 }
 0x81a   : > { %v965_v49 = vpop.f32.mrb[16].mxu1 }
 0x81b   : > { %v971_v51 = vpack.c.bf16 %v965_v49, %v965_v49  ;;  %v2113_v52 = vpop.f32.mrb[17].mxu1 }
 0x81c   : > { %v968_v53 = vpop.f32.mrb[18].mxu1  ;;  %v2282_v52 = vld [vmem:[%s2870_s4 + $0x38] sm:$0xff]  }
 0x81d   : > { %v2114_v54 = vpop.f32.mrb[19].mxu1  ;;  %2118 = vmatmul.mubr.msk.bf16.vlgmr.msra.gmra.mrb[20].mxu0 %vm574_vm2, %v971_v51 }
 0x81e   : > { %2128 = vmatpush3.bf16.msra.mxu0 %v2273_v50  ;;  %2131 = vmatprep.mubr.msk.bf16.mxu0 %vm2398_vm1, %v2397_v10 }
 0x81f   : > { %2129 = vmatprep.subr.bf16.mxu0 %v2397_v10 }
 0x822   : > { %v1060_v56 = vpop.f32.mrb[20].mxu1  ;;  %2130 = vmatpush3.bf16.msra.mxu0 %v2274_v55 }
 0x823   : > { %v2125_v58 = vpop.f32.mrb[21].mxu1  ;;  %2143 = vmatprep.subr.bf16.mxu0 %v2397_v10 }
 0x824   : > { %v1063_v59 = vpop.f32.mrb[22].mxu1 }
 0x825   : > { %v2126_v60 = vpop.f32.mrb[23].mxu1  ;;  %2132 = vmatmul.mubr.msk.bf16.vlgmr.msra.gmra.mrb[24].mxu0 %vm369_vm0, %v2548_v23 }
 0x826   : > { %2144 = vmatpush3.bf16.msra.mxu0 %v2275_v57  ;;  %2147 = vmatprep.mubr.msk.bf16.mxu0 %vm2398_vm1, %v2397_v10 }
 0x827   : > { %2145 = vmatprep.subr.bf16.mxu0 %v2397_v10 }
 0x82a   : > { %v1174_v62 = vpop.f32.mrb[24].mxu1  ;;  %2146 = vmatpush3.bf16.msra.mxu0 %v2276_v61 }
 0x82b   : > { %v1238_v63 = vpack.c.bf16 %v1174_v62, %v1174_v62  ;;  %v2141_v0 = vpop.f32.mrb[25].mxu1  ;;  %2157 = vmatprep.subr.bf16.mxu0 %v2397_v10 }
 0x82c   : > { %v1177_v2 = vpop.f32.mrb[26].mxu1 }
 0x82d   : > { %v1243_v3 = vsel %vm574_vm2, %v1238_v63, 0  ;;  %v2142_v4 = vpop.f32.mrb[27].mxu1  ;;  %2148 = vmatmul.mubr.msk.bf16.vlgmr.msra.gmra.mrb[28].mxu0 %vm369_vm0, %v2548_v23 }
 0x82e   : > { %2152 = vmatpush3.bf16.xpose.msra.mxu1 %v1243_v3  ;;  %2159 = vmatprep.mubr.msk.bf16.mxu0 %vm2398_vm1, %v2397_v10 }
 0x82f   : > { %2163 = vmatprep.subr.bf16.mxu1 %v2397_v10 }
 0x8f0   : > { %v1014_v5 = vpop.f32.mrb[20].mxu0 }
 0x8f1   : > { %v2697_v6 = vadd.f32 %v1060_v56, %v1014_v5  ;;  %v2119_v7 = vpop.f32.mrb[21].mxu0 }
 0x8f2   : > { %v1017_v8 = vpop.f32.mrb[22].mxu0 }
 0x8f3   : > { %v2120_v9 = vpop.f32.mrb[23].mxu0 }
 0x8f8   : > { %v1117_v11 = vpop.f32.mrb[24].mxu0 }
 0x8f9   : > { %v1237_v12 = vpack.c.bf16 %v1117_v11, %v1117_v11  ;;  %v2133_v13 = vpop.f32.mrb[25].mxu0 }
 0x8fa   : > { %v1120_v14 = vpop.f32.mrb[26].mxu0  ;;  %v1969_v13 = vld [vmem:[%s2874_s8 + $0x18] sm:$0xff] }
 0x8fb   : > { %v2134_v15 = vpop.f32.mrb[27].mxu0  ;;  %2154 = vmatmul.mubr.msk.bf16.vlgmr.msra.gmra.mrb[28].mxu1 %vm574_vm2, %v1237_v12 }
 0x8fc   : > { %2165 = vmatprep.mubr.msk.bf16.mxu1 %vm2398_vm1, %v2397_v10  ;;  %2164 = vmatpush3.bf16.msra.mxu1 %v1357_v37 }
 0x8fd   : > { %2177 = vmatprep.subr.bf16.mxu1 %v2397_v10 }
 0x900   : > { %v1231_v16 = vpop.f32.mrb[28].mxu0 }
 0x901   : > { %v1303_v17 = vpack.c.bf16 %v1231_v16, %v1231_v16  ;;  %v2149_v18 = vpop.f32.mrb[29].mxu0 }
 0x902   : > { %v1234_v19 = vpop.f32.mrb[30].mxu0 }
 0x903   : > { %v1308_v20 = vsel %vm641_vm3, %v1303_v17, 0  ;;  %v2150_v21 = vpop.f32.mrb[31].mxu0 }
 0x904   : > { %2158 = vmatpush3.bf16.msra.mxu0 %v1308_v20 }
 0x905   : > { %2169 = vmatprep.subr.bf16.mxu0 %v2397_v10 }
 0x9ce   : > { %v1279_v22 = vpop.f32.mrb[28].mxu1 }
 0x9cf   : > { %v1285_v25 = vmul.f32 0.35355338, %v1279_v22  ;;  %v2155_v26 = vpop.f32.mrb[29].mxu1 }
 0x9d0   : > { %v1282_v27 = vpop.f32.mrb[30].mxu1 }
 0x9d1   : > { %v2156_v28 = vpop.f32.mrb[31].mxu1  ;;  %v1288_v29 = vadd.f32 %v1942_v24, %v1285_v25  ;;  %v1972_v25 = vld [vmem:[%s2872_s6 + $0xc] sm:$0xf] }
 0x9d2   : > { %v1691_v26 = vsel %vm641_vm3, %v1972_v25, 0 }
 0x9d3   : > { %v1289_v30 = vsel %vm574_vm2, %v1288_v29, -inf }
 0x9d4   : > { %1290 = vmax.xlane.f32.xlu0 %v1289_v30 }
 0xa61   : > { %v1291_v31 = vpop.xlane.xlu0 %1290 }
 0xa62   : > { %v1292_v32 = vsub.f32 %v1288_v29, %v1291_v31 }
 0xa64   : > { %v1293_v33 = vmul.f32 1.442695, %v1292_v32 }
 0xa66   : > { %2293 = vpow2.f32 %v1293_v33 }
 0xa70   : > { %v2294_v34 = vpop.eup %2293 }
 0xa71   : > { %v1295_v35 = vsel %vm574_vm2, %v2294_v34, 0.0 }
 0xa72   : > { %1296 = vadd.xlane.f32.xlu1 %v1295_v35 }
 0xaff   : > { %v1297_v38 = vpop.xlane.xlu1 %1296 }
 0xb00   : > { %2295 = vrcp.f32 %v1297_v38 }
 0xb0a   : > { %v2296_v39 = vpop.eup %2295 }
 0xb0b   : > { %v1299_v40 = vmul.f32 %v2296_v39, %v2294_v34 }
 0xb0d   : > { %v1302_v42 = vpack.c.bf16 %v1299_v40, %v1299_v40  ;;  %1943 = vst.msk [vmem:[%s2612_s27 + $0x10] sm:$0xff] %vm574_vm2, %v1299_v40 }
 0xb0f   : > { %2160 = vmatmul.mubr.msk.bf16.vlgmr.msra.gmra.mrb[32].mxu0 %vm574_vm2, %v1302_v42 }
 0xb10   : > { %2170 = vmatpush3.bf16.msra.mxu0 %v2277_v41  ;;  %2173 = vmatprep.mubr.msk.bf16.mxu0 %vm2398_vm1, %v2397_v10 }
 0xb11   : > { %2171 = vmatprep.subr.bf16.mxu0 %v2397_v10 }
 0xb14   : > { %2172 = vmatpush3.bf16.msra.mxu0 %v2278_v43 }
 0xb15   : > { %2185 = vmatprep.subr.bf16.mxu0 %v2397_v10 }
 0xb17   : > { %2174 = vmatmul.mubr.msk.bf16.vlgmr.msra.gmra.mrb[36].mxu0 %vm369_vm0, %v2548_v23 }
 0xb18   : > { %2186 = vmatpush3.bf16.msra.mxu0 %v2279_v44  ;;  %2189 = vmatprep.mubr.msk.bf16.mxu0 %vm2398_vm1, %v2397_v10 }
 0xb19   : > { %2187 = vmatprep.subr.bf16.mxu0 %v2397_v10 }
 0xb1c   : > { %2188 = vmatpush3.bf16.msra.mxu0 %v2280_v45 }
 0xb1d   : > { %2199 = vmatprep.subr.bf16.mxu0 %v2397_v10 }
 0xb1f   : > { %2190 = vmatmul.mubr.msk.bf16.vlgmr.msra.gmra.mrb[40].mxu0 %vm369_vm0, %v2548_v23 }
 0xb20   : > { %2201 = vmatprep.mubr.msk.bf16.mxu0 %vm2398_vm1, %v2397_v10 }
 0xbe2   : > { %v1344_v46 = vpop.f32.mrb[32].mxu0 }
 0xbe3   : > { %v1350_v48 = vpack.c.bf16 %v1344_v46, %v1344_v46  ;;  %v2161_v49 = vpop.f32.mrb[33].mxu0 }
 0xbe4   : > { %v1347_v50 = vpop.f32.mrb[34].mxu0 }
 0xbe5   : > { %v2162_v51 = vpop.f32.mrb[35].mxu0  ;;  %2166 = vmatmul.mubr.msk.bf16.vlgmr.msra.gmra.mrb[32].mxu1 %vm574_vm2, %v1350_v48 }
 0xbe6   : > { %2178 = vmatpush3.bf16.msra.mxu1 %v2281_v47  ;;  %2181 = vmatprep.mubr.msk.bf16.mxu1 %vm2398_vm1, %v2397_v10 }
 0xbe7   : > { %2179 = vmatprep.subr.bf16.mxu1 %v2397_v10 }
 0xbea   : > { %v1451_v53 = vpop.f32.mrb[36].mxu0  ;;  %2180 = vmatpush3.bf16.msra.mxu1 %v2282_v52 }
 0xbeb   : > { %v2175_v54 = vpop.f32.mrb[37].mxu0  ;;  %2193 = vmatprep.subr.bf16.mxu1 %v2397_v10  ;;  %v1571_v12 = vpack.c.bf16 %v1451_v53, %v1451_v53 }
 0xbec   : > { %v1454_v55 = vpop.f32.mrb[38].mxu0 }
 0xbed   : > { %v2176_v56 = vpop.f32.mrb[39].mxu0  ;;  %2182 = vmatmul.mubr.msk.bf16.vlgmr.msra.gmra.mrb[36].mxu1 %vm369_vm0, %v2548_v23 }
 0xbee   : > { %2195 = vmatprep.mubr.msk.bf16.mxu1 %vm2398_vm1, %v2397_v10 }
 0xbf2   : > { %v1565_v57 = vpop.f32.mrb[40].mxu0 }
 0xbf3   : > { %v1637_v58 = vpack.c.bf16 %v1565_v57, %v1565_v57  ;;  %v2191_v59 = vpop.f32.mrb[41].mxu0 }
 0xbf4   : > { %v1568_v60 = vpop.f32.mrb[42].mxu0 }
 0xbf5   : > { %v1642_v61 = vsel %vm641_vm3, %v1637_v58, 0  ;;  %v2192_v62 = vpop.f32.mrb[43].mxu0 }
 0xbf6   : > { %2200 = vmatpush3.bf16.msra.mxu0 %v1642_v61 }
 0xcb8   : > { %v1393_v63 = vpop.f32.mrb[32].mxu1 }
 0xcb9   : > { %v2760_v0 = vadd.f32 %v1393_v63, %v2697_v6  ;;  %v2167_v2 = vpop.f32.mrb[33].mxu1 }
 0xcba   : > { %v1396_v3 = vpop.f32.mrb[34].mxu1 }
 0xcbb   : > { %v2168_v4 = vpop.f32.mrb[35].mxu1 }
 0xcc0   : > { %v1508_v5 = vpop.f32.mrb[36].mxu1 }
 0xcc1   : > { %v1572_v23 = vpack.c.bf16 %v1508_v5, %v1508_v5  ;;  %v2183_v7 = vpop.f32.mrb[37].mxu1 }
 0xcc2   : > { %v1511_v8 = vpop.f32.mrb[38].mxu1 }
 0xcc3   : > { %v1577_v9 = vsel %vm574_vm2, %v1572_v23, 0  ;;  %v2184_v11 = vpop.f32.mrb[39].mxu1 }
 0xcc4   : > { %2194 = vmatpush3.bf16.xpose.msra.mxu1 %v1577_v9 }
 0xcc5   : > { %2205 = vmatprep.subr.bf16.mxu1 %v2397_v10 }
 0xccb   : > { %2196 = vmatmul.mubr.msk.bf16.vlgmr.msra.gmra.mrb[40].mxu1 %vm574_vm2, %v1571_v12 }
 0xccc   : > { %2207 = vmatprep.mubr.msk.bf16.mxu1 %vm2398_vm1, %v2397_v10  ;;  %2206 = vmatpush3.bf16.msra.mxu1 %v1691_v26 }
 0xd9e   : > { %v1613_v6 = vpop.f32.mrb[40].mxu1 }
 0xd9f   : > { %v1619_v14 = vmul.f32 0.35355338, %v1613_v6  ;;  %v2197_v15 = vpop.f32.mrb[41].mxu1 }
 0xda0   : > { %v1616_v16 = vpop.f32.mrb[42].mxu1 }
 0xda1   : > { %v2198_v17 = vpop.f32.mrb[43].mxu1  ;;  %v1622_v18 = vadd.f32 %v1969_v13, %v1619_v14 }
 0xda3   : > { %v1623_v19 = vsel %vm574_vm2, %v1622_v18, -inf }
 0xda4   : > { %1624 = vmax.xlane.f32.xlu0 %v1623_v19 }
 0xe31   : > { %v1625_v20 = vpop.xlane.xlu0 %1624 }
 0xe32   : > { %v1626_v21 = vsub.f32 %v1622_v18, %v1625_v20 }
 0xe34   : > { %v1627_v22 = vmul.f32 1.442695, %v1626_v21 }
 0xe36   : > { %2297 = vpow2.f32 %v1627_v22 }
 0xe40   : > { %v2298_v24 = vpop.eup %2297 }
 0xe41   : > { %v1629_v10 = vsel %vm574_vm2, %v2298_v24, 0.0 }
 0xe42   : > { %1630 = vadd.xlane.f32.xlu1 %v1629_v10 }
 0xecf   : > { %v1631_v27 = vpop.xlane.xlu1 %1630 }
 0xed0   : > { %2299 = vrcp.f32 %v1631_v27 }
 0xeda   : > { %v2300_v28 = vpop.eup %2299 }
 0xedb   : > { %v1633_v29 = vmul.f32 %v2300_v28, %v2298_v24 }
 0xedd   : > { %v1636_v30 = vpack.c.bf16 %v1633_v29, %v1633_v29  ;;  %1970 = vst.msk [vmem:[%s2612_s27 + $0x18] sm:$0xff] %vm574_vm2, %v1633_v29  ;;  %s2307_s27 = scalar_lea.vmem %s2306_s11, 1024 }
 0xede   : > { %p2309_p1 = scmp.lt.s32.totalorder %s2307_s27, %s2301_s29 }
 0xedf   : > { %2202 = vmatmul.mubr.msk.bf16.vlgmr.msra.gmra.mrb[44].mxu0 %vm574_vm2, %v1636_v30 }
 0xee0   : > { %p2310_p2 = por %p2309_p1, %p2308_p0 }
 0xee2   : > { %p2311_p3 = pnand %p2310_p2, %p2304_p13 }
 0xfb2   : > { %v1678_v31 = vpop.f32.mrb[44].mxu0 }
 0xfb3   : > { %v1684_v32 = vpack.c.bf16 %v1678_v31, %v1678_v31  ;;  %v2203_v33 = vpop.f32.mrb[45].mxu0 }
 0xfb4   : > { %v1681_v34 = vpop.f32.mrb[46].mxu0 }
 0xfb5   : > { %v2204_v35 = vpop.f32.mrb[47].mxu0  ;;  %2208 = vmatmul.mubr.msk.bf16.vlgmr.msra.gmra.mrb[44].mxu1 %vm574_vm2, %v1684_v32 }
 0xfb6   : > { %2314 = shalt.err (!%p2311_p3)
}
 0xfb7   : > { %s2315_s18 = scalar_lea.hbm %s2787_s26, 512  ;;  %s2319_s30 = scalar_lea.hbm %s2876_s10, 1024 }
 0xfb8   : > { %p2316_p4 = scmp.ne.s32.totalorder %s2787_s26, %s2315_s18  ;;  %p2320_p9 = scmp.lt.u32.totalorder %s2787_s26, %s2876_s10 }
 0xfb9   : > { %p2321_p10 = scmp.lt.u32.totalorder %s2319_s30, %s2315_s18  ;;  %p2323_p12 = scmp.lt.u32.totalorder %s2315_s18, %s2787_s26 }
 0xfba   : > { %p2317_p7 = pnand %p2316_p4, %p2496_p5 }
 0xfbb   : > { %p2322_p11 = por %p2321_p10, %p2320_p9 }
 0xfbc   : > { %p2318_p8 = pneg %p2317_p7 }
 0xfbd   : > { %p2324_p13 = por %p2323_p12, %p2322_p11 }
 0xfbf   : > { %p2325_p0 = pnand %p2324_p13, %p2318_p8 }
 0xfc1   : > { %2328 = shalt.err (!%p2325_p0)
}
 0xfc2   : > { %s2400_s29 = smov 128   ;;  %s2401_s27 = smov 8   ;;  %v1974_v37 = vld [vmem:[%s2873_s7] ss:$0 sm:$0xff]  ;;  %vm1744_vm4 = vcmask 257024  }
 0xfc3   : > { %s2881_s21 = scalar_lea.sflag [#allocation5], %s2606_s20  ;;  %s1876_s25 = sshll.u32 %s2606_s20, 2 }
 0xfc4   : > { %2212 = dma.vmem_to_hbm [thread:$0]  (%p2496_p5), %s2782_s12, 512, %s2787_s26, %s2881_s21, %s2400_s29, %s2400_s29, %s2401_s27  }
 0xfc5   : > { %s1977_s18 = sshll.u32 %s2479_s17, 6  ;;  %s354_s11 = scalar_lea.vmem [#allocation2], %s1876_s25 }
 0xfc6   : > { %s1765_s0 = sshll.u32 %s354_s11, 4  ;;  %s2823_s29 = scalar_lea.hbm %s2875_s9, %s1977_s18  ;;  %s2825_s0 = int_to_ptr.vmem [resolvable:$true] %s1765_s0 }
 0xfc7   : > { %s1747_s27 = scalar_lea.sflag [#allocation3], %s2606_s20  ;;  %s2329_s21 = scalar_lea.vmem %s2825_s0, 64 }
 0xfc8   : > { %p2330_p1 = scmp.ne.s32.totalorder %s2825_s0, %s2329_s21  ;;  %s2402_s17 = smov [#allocation2]  }
 0xfc9   : > { %s2333_s25 = sshll.u32 %s2402_s17, 4  ;;  %s2334_s25 = int_to_ptr.vmem [resolvable:$false] %s2333_s25 }
 0xfca   : > { %p2331_p2 = pnand %p2330_p1, %p2496_p5  ;;  %s2335_s28 = scalar_lea.vmem %s2334_s25, 128 }
 0xfcb   : > { %p2336_p4 = scmp.lt.s32.totalorder %s2825_s0, %s2334_s25  ;;  %p2337_p7 = scmp.lt.s32.totalorder %s2335_s28, %s2329_s21 }
 0xfcc   : > { %p2332_p3 = pneg %p2331_p2 }
 0xfcd   : > { %p2338_p8 = por %p2337_p7, %p2336_p4 }
 0xfcf   : > { %p2339_p9 = pnand %p2338_p8, %p2332_p3 }
0x1088   : > { %v1727_v36 = vpop.f32.mrb[44].mxu1 }
0x1089   : > { %v1733_v38 = vadd.f32 %v1727_v36, %v2760_v0  ;;  %v2209_v39 = vpop.f32.mrb[45].mxu1 }
0x108a   : > { %v1730_v40 = vpop.f32.mrb[46].mxu1 }
0x108b   : > { %v1741_v41 = vadd.f32 %v1974_v37, %v1733_v38  ;;  %v2210_v42 = vpop.f32.mrb[47].mxu1 }
0x108d   : > { %v1742_v43 = vadd.f32 %v1741_v41, %v2511_v1 }
0x108f   : > { %v1743_v44 = vpack.c.bf16 %v1742_v43, %v1742_v43 }
0x1091   : > { %1745 = vst.msk [vmem:[%s354_s11] sm:$0xf] %vm1744_vm4, %v1743_v44 }
0x1092   : > { %2342 = shalt.err (!%p2339_p9)
}
0x1093   : > { %s2343_s20 = scalar_lea.hbm %s2823_s29, 64  ;;  %s2347_s11 = scalar_lea.hbm %s2875_s9, 128 }
0x1094   : > { %p2344_p10 = scmp.ne.s32.totalorder %s2823_s29, %s2343_s20  ;;  %p2348_p13 = scmp.lt.u32.totalorder %s2823_s29, %s2875_s9 }
0x1095   : > { %p2349_p0 = scmp.lt.u32.totalorder %s2347_s11, %s2343_s20  ;;  %p2351_p2 = scmp.lt.u32.totalorder %s2343_s20, %s2823_s29 }
0x1096   : > { %p2345_p11 = pnand %p2344_p10, %p2496_p5 }
0x1097   : > { %p2350_p1 = por %p2349_p0, %p2348_p13 }
0x1098   : > { %p2346_p12 = pneg %p2345_p11 }
0x1099   : > { %p2352_p3 = por %p2351_p2, %p2350_p1 }
0x109b   : > { %p2353_p4 = pnand %p2352_p3, %p2346_p12 }
0x109d   : > { %2356 = shalt.err (!%p2353_p4)
}
0x109e   : > { %2211 = dma.vmem_to_hbm [thread:$0]  (%p2496_p5), %s2825_s0, 64, %s2823_s29, %s1747_s27  }
0x109f PF: > { %p2222_p7 = scmp.ge.s32.totalorder %s2395_s16, 2  ;;  %s1793_s21 = sand.u32 1, %s2383_s13  }
0x10a0   : > { %s1794_s17 = scalar_lea.sflag [#allocation3], %s1793_s21 }
0x10a1   : > { %p2216_p8 = pnand %p2222_p7, %p2500_p6 }
0x10a3   : > { %2374 = dma.done.wait (!%p2216_p8), %s1794_s17, 64  }
0x10a4   : > { %2376 = vsyncadd (!%p2216_p8), %s1794_s17, 4294967232  ;;  %s1803_s25 = scalar_lea.sflag [#allocation5], %s1793_s21 }
0x10a5   : > { %2378 = dma.done.wait (!%p2216_p8), %s1803_s25, 512  }
0x10a6   : > { %2380 = vsyncadd (!%p2216_p8), %s1803_s25, 4294966784  ;;  %p24_p5 = scmp.ge.s32.totalorder %s2483_s19, 4   ;;  %s2882_s13 = smov %s2387_s14 }
0x10a7   : > { %s2883_s14 = smov %s2391_s15  ;;  %s2884_s15 = smov %s2494_s22 }
0x10a8   : > { %s2885_s16 = smov %s2483_s19  ;;  %26 = sbr.rel (!%p24_p5) target bundleno = 7 (0x7), region = 126 }
0x10af   :  { %1808 = vsyncpa [#allocation3], 1 }
0x10b0   :  { %1810 = vsyncpa [#allocation3 + $0x1], 1 }
0x10b1   :  { %1811 = vsyncpa [#allocation5], 1 }
0x10b2   :  { %1813 = vsyncpa [#allocation5 + $0x1], 1 }

</bundles_post_ra>
